<compile_context>
chip_gen: v6e
topology: v6e:2x2x1
jax: 0.10.0
libtpu: 0.0.40
codegen_flags: <defaults>
</compile_context>

<pallas_src>
import jax
import jax.numpy as jnp
from jax import lax
from jax.experimental import pallas as pl
from jax.experimental.pallas import tpu as pltpu

# Small, module-consistent sizes (the original uses PITCH_NUM=88, HIDDEN_DIM=128).
PITCH_NUM = 16
HIDDEN_DIM = 32
NUM_LAYERS = 2


# ----------------------------- Pallas kernels -----------------------------

def _dense_kernel(x_ref, w_ref, b_ref, o_ref):
    y = jnp.dot(x_ref[...], w_ref[...], preferred_element_type=jnp.float32) + b_ref[...]
    o_ref[...] = y.astype(o_ref.dtype)


def _dense_sigmoid_kernel(x_ref, w_ref, b_ref, o_ref):
    y = jnp.dot(x_ref[...], w_ref[...], preferred_element_type=jnp.float32) + b_ref[...]
    o_ref[...] = jax.nn.sigmoid(y).astype(o_ref.dtype)


def dense(x, w, b, *, sigmoid=False, tile_m=512):
    """x: (M, K), w: (K, N), b: (N,) -> (M, N).

    Tiles over M with ~512-row blocks for production sizes (here M=T*B=16 => one block),
    with the M axis marked "parallel" (megacore shardable on v7x).
    """
    M, K = x.shape
    K2, N = w.shape
    assert K == K2
    tm = M if M <= tile_m else tile_m
    kernel = _dense_sigmoid_kernel if sigmoid else _dense_kernel
    return pl.pallas_call(
        kernel,
        out_shape=jax.ShapeDtypeStruct((M, N), x.dtype),
        grid=(pl.cdiv(M, tm),),
        in_specs=[
            pl.BlockSpec((tm, K), lambda i: (i, 0)),
            pl.BlockSpec((K, N), lambda i: (0, 0)),
            pl.BlockSpec((1, N), lambda i: (0, 0)),
        ],
        out_specs=pl.BlockSpec((tm, N), lambda i: (i, 0)),
        compiler_params=pltpu.CompilerParams(dimension_semantics=("parallel",)),
    )(x, w, b.reshape(1, N))


def _bigru_kernel(xp_ref, whf_ref, whb_ref, bhnf_ref, bhnb_ref, o_ref):
    """One full bidirectional GRU layer in a single invocation.

    xp_ref : (T, B, 6H) time-major input projections, columns [r,z,n]_fwd | [r,z,n]_bwd,
             with b_ih and the b_hr/b_hz halves of b_hh already folded in.
    wh*_ref: (H, 3H) fused recurrent weights (transposed), columns [r|z|n].
    bhn*   : (1, H) recurrent n-gate bias (must stay inside r * (...)).
    o_ref  : (T, B, 2H) time-major output, columns [h_fwd | h_bwd], backward un-reversed.
    """
    T, B, _ = xp_ref.shape
    H = whf_ref.shape[0]

    # Hoist weights/biases out of the loop (loaded once into vregs).
    whf = whf_ref[...]
    whb = whb_ref[...]
    bhnf = bhnf_ref[...]
    bhnb = bhnb_ref[...]

    def gru_cell(xg, h, wh, bhn):
        # Single fused (B,H)x(H,3H) MXU matmul for all three gates.
        gh = jnp.dot(h, wh, preferred_element_type=jnp.float32)
        r = jax.nn.sigmoid(xg[:, :H] + gh[:, :H])
        z = jax.nn.sigmoid(xg[:, H:2 * H] + gh[:, H:2 * H])
        n = jnp.tanh(xg[:, 2 * H:3 * H] + r * (gh[:, 2 * H:3 * H] + bhn))
        return (1.0 - z) * n + z * h

    h_f = jnp.zeros((B, H), jnp.float32)
    h_b = jnp.zeros((B, H), jnp.float32)

    # T is small and static: full unroll (equivalent to fori_loop(..., unroll=True)),
    # with static indices. For long production T, switch to lax.fori_loop to bound
    # compile time / live ranges.
    for t in range(T):
        tb = T - 1 - t                      # backward direction reads reversed time
        xg_f = xp_ref[t]                    # (B, 6H)
        xg_b = xp_ref[tb]
        h_f = gru_cell(xg_f[:, :3 * H], h_f, whf, bhnf)
        h_b = gru_cell(xg_b[:, 3 * H:], h_b, whb, bhnb)
        # Backward half is written back to its original (un-reversed) time slot, so no
        # wrapper-side flip/concat is needed. At production H=128 both slices are
        # 128-lane aligned (lane-dense stores).
        o_ref[t, :, :H] = h_f.astype(o_ref.dtype)
        o_ref[tb, :, H:] = h_b.astype(o_ref.dtype)


def bigru_layer(xp, wh_f, wh_b, bhn_f, bhn_b):
    """xp: (T, B, 6H) fused projections -> (T, B, 2H) time-major bidirectional output."""
    T, B, six_h = xp.shape
    H = wh_f.shape[0]
    assert six_h == 6 * H
    return pl.pallas_call(
        _bigru_kernel,
        out_shape=jax.ShapeDtypeStruct((T, B, 2 * H), xp.dtype),
        grid=(1,),
        in_specs=[
            pl.BlockSpec((T, B, 6 * H), lambda i: (0, 0, 0)),
            pl.BlockSpec((H, 3 * H), lambda i: (0, 0)),
            pl.BlockSpec((H, 3 * H), lambda i: (0, 0)),
            pl.BlockSpec((1, H), lambda i: (0, 0)),
            pl.BlockSpec((1, H), lambda i: (0, 0)),
        ],
        out_specs=pl.BlockSpec((T, B, 2 * H), lambda i: (0, 0, 0)),
        compiler_params=pltpu.CompilerParams(dimension_semantics=("arbitrary",)),
    )(xp, wh_f, wh_b, bhn_f, bhn_b)


# ----------------------------- Model (wrapper) -----------------------------

def init_params(key, input_dim, hidden_dim, target_dim):
    params = {"gru": {}}
    k_gru = 1.0 / jnp.sqrt(hidden_dim)
    keys = jax.random.split(key, NUM_LAYERS * 2 * 4 + 2)
    idx = 0
    for layer in range(NUM_LAYERS):
        in_dim = input_dim if layer == 0 else 2 * hidden_dim
        for direction in range(2):  # 0 = forward, 1 = backward
            w_ih = jax.random.uniform(keys[idx], (3 * hidden_dim, in_dim),
                                      minval=-k_gru, maxval=k_gru, dtype=jnp.float32); idx += 1
            w_hh = jax.random.uniform(keys[idx], (3 * hidden_dim, hidden_dim),
                                      minval=-k_gru, maxval=k_gru, dtype=jnp.float32); idx += 1
            b_ih = jax.random.uniform(keys[idx], (3 * hidden_dim,),
                                      minval=-k_gru, maxval=k_gru, dtype=jnp.float32); idx += 1
            b_hh = jax.random.uniform(keys[idx], (3 * hidden_dim,),
                                      minval=-k_gru, maxval=k_gru, dtype=jnp.float32); idx += 1
            params["gru"][(layer, direction)] = dict(w_ih=w_ih, w_hh=w_hh, b_ih=b_ih, b_hh=b_hh)
    k_fc = 1.0 / jnp.sqrt(2 * hidden_dim)
    params["fc_w"] = jax.random.uniform(keys[idx], (target_dim, 2 * hidden_dim),
                                        minval=-k_fc, maxval=k_fc, dtype=jnp.float32); idx += 1
    params["fc_b"] = jax.random.uniform(keys[idx], (target_dim,),
                                        minval=-k_fc, maxval=k_fc, dtype=jnp.float32)
    return params


def transduction_rnn_forward(params, x):
    """x: (B, T, input_dim) -> (B, T, target_dim), matching the PyTorch forward."""
    B, T, Din = x.shape
    H = params["gru"][(0, 0)]["w_hh"].shape[1]
    P = params["fc_w"].shape[0]

    # One transpose on the way in: time-major flatten (B,T,D) -> (T*B, D). Between layers
    # everything stays time-major; reshapes below are contiguous (free) metadata ops.
    h2d = jnp.transpose(x, (1, 0, 2)).reshape(T * B, Din)

    for layer in range(NUM_LAYERS):
        pf = params["gru"][(layer, 0)]
        pb = params["gru"][(layer, 1)]

        # Fused input-projection weights for both directions: (Din_l, 6H).
        w_in = jnp.concatenate([jnp.transpose(pf["w_ih"]), jnp.transpose(pb["w_ih"])], axis=1)

        def fold_bias(p):
            # Fold b_hr, b_hz into the input bias; keep b_hn for in-kernel use.
            return p["b_ih"] + jnp.concatenate(
                [p["b_hh"][:2 * H], jnp.zeros((H,), p["b_hh"].dtype)])

        b_in = jnp.concatenate([fold_bias(pf), fold_bias(pb)])           # (6H,)

        # One big MXU matmul over all timesteps (both directions at once).
        xp = dense(h2d, w_in, b_in).reshape(T, B, 6 * H)                 # (T, B, 6H)

        # Single kernel runs the full bidirectional recurrence for this layer.
        out = bigru_layer(
            xp,
            jnp.transpose(pf["w_hh"]), jnp.transpose(pb["w_hh"]),
            pf["b_hh"][2 * H:].reshape(1, H), pb["b_hh"][2 * H:].reshape(1, H),
        )                                                                # (T, B, 2H)
        h2d = out.reshape(T * B, 2 * H)

    # Final FC + sigmoid with the output lane-padded to a multiple of 128 so the store is
    # lane-dense (unmasked vst); slice the valid columns afterwards.
    Np = ((P + 127) // 128) * 128
    fc_w = jnp.zeros((2 * H, Np), x.dtype).at[:, :P].set(jnp.transpose(params["fc_w"]))
    fc_b = jnp.zeros((Np,), x.dtype).at[:P].set(params["fc_b"])
    y = dense(h2d, fc_w, fc_b, sigmoid=True)[:, :P]                      # (T*B, P)

    # One transpose on the way out: back to batch-first.
    return jnp.transpose(y.reshape(T, B, P), (1, 0, 2))                  # (B, T, P)


# ----------------------------- Pure-JAX reference -----------------------------

def _gru_dir_ref(x, w_ih, w_hh, b_ih, b_hh, H):
    B, T, _ = x.shape

    def step(h, x_t):
        gi = x_t @ w_ih.T + b_ih
        gh = h @ w_hh.T + b_hh
        r = jax.nn.sigmoid(gi[:, :H] + gh[:, :H])
        z = jax.nn.sigmoid(gi[:, H:2 * H] + gh[:, H:2 * H])
        n = jnp.tanh(gi[:, 2 * H:] + r * gh[:, 2 * H:])
        h_new = (1.0 - z) * n + z * h
        return h_new, h_new

    _, hs = lax.scan(step, jnp.zeros((B, H), x.dtype), x.transpose(1, 0, 2))
    return hs.transpose(1, 0, 2)


def forward_ref(params, x):
    H = params["gru"][(0, 0)]["w_hh"].shape[1]
    layer_in = x
    for layer in range(NUM_LAYERS):
        outs = []
        for direction in range(2):
            p = params["gru"][(layer, direction)]
            xi = jnp.flip(layer_in, axis=1) if direction == 1 else layer_in
            o = _gru_dir_ref(xi, p["w_ih"], p["w_hh"], p["b_ih"], p["b_hh"], H)
            if direction == 1:
                o = jnp.flip(o, axis=1)
            outs.append(o)
        layer_in = jnp.concatenate(outs, axis=-1)
    return jax.nn.sigmoid(layer_in @ params["fc_w"].T + params["fc_b"])


# ----------------------------- Main -----------------------------

if __name__ == "__main__":
    input_dim = PITCH_NUM + 1   # 17
    target_dim = PITCH_NUM      # 16
    hidden_dim = HIDDEN_DIM     # 32
    B, T = 2, 8

    key = jax.random.PRNGKey(0)
    k_params, k_x = jax.random.split(key)
    params = init_params(k_params, input_dim, hidden_dim, target_dim)
    x = jax.random.normal(k_x, (B, T, input_dim), dtype=jnp.float32)

    fwd = jax.jit(transduction_rnn_forward)
    out = jax.block_until_ready(fwd(params, x))
    assert out.shape == (B, T, target_dim), out.shape

    ref = jax.block_until_ready(forward_ref(params, x))
    assert jnp.allclose(out, ref, rtol=1e-3, atol=1e-3), float(jnp.max(jnp.abs(out - ref)))

    print("KERNEL_OK")
</pallas_src>

<mosaic_0001>
module attributes {stable_mosaic.version = 11 : i64} {
  func.func @_dense_kernel(%arg0: i32, %arg1: memref<16x17xf32, #tpu.memory_space<vmem>>, %arg2: memref<17x192xf32, #tpu.memory_space<vmem>>, %arg3: memref<1x192xf32, #tpu.memory_space<vmem>>, %arg4: memref<16x192xf32, #tpu.memory_space<vmem>>) attributes {dimension_semantics = [#tpu.dimension_semantics<parallel>], iteration_bounds = array<i64: 1>, scalar_prefetch = 0 : i64, scratch_operands = 0 : i64, tpu.core_type = #tpu.core_type<tc>, window_params = [{transform_indices = @transform_0, window_bounds = array<i64: 16, 17>}, {pipeline_mode = #tpu.pipeline_mode<synchronous>, transform_indices = @transform_1, window_bounds = array<i64: 17, 192>}, {pipeline_mode = #tpu.pipeline_mode<synchronous>, transform_indices = @transform_2, window_bounds = array<i64: 1, 192>}, {transform_indices = @transform_3, window_bounds = array<i64: 16, 192>}]} {
    %c0 = arith.constant 0 : index
    %c0_0 = arith.constant 0 : index
    %0 = vector.load %arg1[%c0, %c0_0] : memref<16x17xf32, #tpu.memory_space<vmem>>, vector<16x17xf32>
    %c0_1 = arith.constant 0 : index
    %c0_2 = arith.constant 0 : index
    %1 = vector.load %arg2[%c0_1, %c0_2] : memref<17x192xf32, #tpu.memory_space<vmem>>, vector<17x192xf32>
    %cst = arith.constant dense<0.000000e+00> : vector<16x192xf32>
    %2 = tpu.matmul %0, %1, %cst {dimension_numbers = #tpu.dot_dimension_numbers<[1], [0], [0], [1], [0, 0, 1, 1], [], []>} : vector<16x17xf32>, vector<17x192xf32>, vector<16x192xf32> -> vector<16x192xf32>
    %c0_3 = arith.constant 0 : index
    %c0_4 = arith.constant 0 : index
    %3 = vector.load %arg3[%c0_3, %c0_4] : memref<1x192xf32, #tpu.memory_space<vmem>>, vector<1x192xf32>
    %4 = vector.broadcast %3 : vector<1x192xf32> to vector<16x192xf32>
    %5 = arith.addf %2, %4 : vector<16x192xf32>
    %c0_5 = arith.constant 0 : index
    %c0_6 = arith.constant 0 : index
    %6 = vector.load %arg4[%c0_5, %c0_6] : memref<16x192xf32, #tpu.memory_space<vmem>>, vector<16x192xf32>
    tpu.vector_store %arg4[%c0_5, %c0_6], %5 {strides = array<i32>} : memref<16x192xf32, #tpu.memory_space<vmem>>, vector<16x192xf32>,
    return
  }
  func.func @transform_0(%arg0: i32) -> (i32, i32) {
    %c0_i32 = arith.constant 0 : i32
    %c0_i32_0 = arith.constant 0 : i32
    return %arg0, %c0_i32 : i32, i32
  }
  func.func @transform_1(%arg0: i32) -> (i32, i32) {
    %c0_i32 = arith.constant 0 : i32
    %c0_i32_0 = arith.constant 0 : i32
    %c0_i32_1 = arith.constant 0 : i32
    return %c0_i32, %c0_i32_0 : i32, i32
  }
  func.func @transform_2(%arg0: i32) -> (i32, i32) {
    %c0_i32 = arith.constant 0 : i32
    %c0_i32_0 = arith.constant 0 : i32
    %c0_i32_1 = arith.constant 0 : i32
    return %c0_i32, %c0_i32_0 : i32, i32
  }
  func.func @transform_3(%arg0: i32) -> (i32, i32) {
    %c0_i32 = arith.constant 0 : i32
    %c0_i32_0 = arith.constant 0 : i32
    return %arg0, %c0_i32 : i32, i32
  }
}

module attributes {stable_mosaic.version = 11 : i64} {
  func.func @_dense_kernel(%arg0: i32, %arg1: memref<16x64xf32, #tpu.memory_space<vmem>>, %arg2: memref<64x192xf32, #tpu.memory_space<vmem>>, %arg3: memref<1x192xf32, #tpu.memory_space<vmem>>, %arg4: memref<16x192xf32, #tpu.memory_space<vmem>>) attributes {dimension_semantics = [#tpu.dimension_semantics<parallel>], iteration_bounds = array<i64: 1>, scalar_prefetch = 0 : i64, scratch_operands = 0 : i64, tpu.core_type = #tpu.core_type<tc>, window_params = [{transform_indices = @transform_0, window_bounds = array<i64: 16, 64>}, {pipeline_mode = #tpu.pipeline_mode<synchronous>, transform_indices = @transform_1, window_bounds = array<i64: 64, 192>}, {pipeline_mode = #tpu.pipeline_mode<synchronous>, transform_indices = @transform_2, window_bounds = array<i64: 1, 192>}, {transform_indices = @transform_3, window_bounds = array<i64: 16, 192>}]} {
    %c0 = arith.constant 0 : index
    %c0_0 = arith.constant 0 : index
    %0 = vector.load %arg1[%c0, %c0_0] : memref<16x64xf32, #tpu.memory_space<vmem>>, vector<16x64xf32>
    %c0_1 = arith.constant 0 : index
    %c0_2 = arith.constant 0 : index
    %1 = vector.load %arg2[%c0_1, %c0_2] : memref<64x192xf32, #tpu.memory_space<vmem>>, vector<64x192xf32>
    %cst = arith.constant dense<0.000000e+00> : vector<16x192xf32>
    %2 = tpu.matmul %0, %1, %cst {dimension_numbers = #tpu.dot_dimension_numbers<[1], [0], [0], [1], [0, 0, 1, 1], [], []>} : vector<16x64xf32>, vector<64x192xf32>, vector<16x192xf32> -> vector<16x192xf32>
    %c0_3 = arith.constant 0 : index
    %c0_4 = arith.constant 0 : index
    %3 = vector.load %arg3[%c0_3, %c0_4] : memref<1x192xf32, #tpu.memory_space<vmem>>, vector<1x192xf32>
    %4 = vector.broadcast %3 : vector<1x192xf32> to vector<16x192xf32>
    %5 = arith.addf %2, %4 : vector<16x192xf32>
    %c0_5 = arith.constant 0 : index
    %c0_6 = arith.constant 0 : index
    %6 = vector.load %arg4[%c0_5, %c0_6] : memref<16x192xf32, #tpu.memory_space<vmem>>, vector<16x192xf32>
    tpu.vector_store %arg4[%c0_5, %c0_6], %5 {strides = array<i32>} : memref<16x192xf32, #tpu.memory_space<vmem>>, vector<16x192xf32>,
    return
  }
  func.func @transform_0(%arg0: i32) -> (i32, i32) {
    %c0_i32 = arith.constant 0 : i32
    %c0_i32_0 = arith.constant 0 : i32
    return %arg0, %c0_i32 : i32, i32
  }
  func.func @transform_1(%arg0: i32) -> (i32, i32) {
    %c0_i32 = arith.constant 0 : i32
    %c0_i32_0 = arith.constant 0 : i32
    %c0_i32_1 = arith.constant 0 : i32
    return %c0_i32, %c0_i32_0 : i32, i32
  }
  func.func @transform_2(%arg0: i32) -> (i32, i32) {
    %c0_i32 = arith.constant 0 : i32
    %c0_i32_0 = arith.constant 0 : i32
    %c0_i32_1 = arith.constant 0 : i32
    return %c0_i32, %c0_i32_0 : i32, i32
  }
  func.func @transform_3(%arg0: i32) -> (i32, i32) {
    %c0_i32 = arith.constant 0 : i32
    %c0_i32_0 = arith.constant 0 : i32
    return %arg0, %c0_i32 : i32, i32
  }
}

module attributes {stable_mosaic.version = 11 : i64} {
  func.func @_bigru_kernel(%arg0: i32, %arg1: memref<8x2x192xf32, #tpu.memory_space<vmem>>, %arg2: memref<32x96xf32, #tpu.memory_space<vmem>>, %arg3: memref<32x96xf32, #tpu.memory_space<vmem>>, %arg4: memref<1x32xf32, #tpu.memory_space<vmem>>, %arg5: memref<1x32xf32, #tpu.memory_space<vmem>>, %arg6: memref<8x2x64xf32, #tpu.memory_space<vmem>>) attributes {dimension_semantics = [#tpu.dimension_semantics<arbitrary>], iteration_bounds = array<i64: 1>, scalar_prefetch = 0 : i64, scratch_operands = 0 : i64, tpu.core_type = #tpu.core_type<tc>, window_params = [{pipeline_mode = #tpu.pipeline_mode<synchronous>, transform_indices = @transform_0, window_bounds = array<i64: 8, 2, 192>}, {pipeline_mode = #tpu.pipeline_mode<synchronous>, transform_indices = @transform_1, window_bounds = array<i64: 32, 96>}, {pipeline_mode = #tpu.pipeline_mode<synchronous>, transform_indices = @transform_2, window_bounds = array<i64: 32, 96>}, {pipeline_mode = #tpu.pipeline_mode<synchronous>, transform_indices = @transform_3, window_bounds = array<i64: 1, 32>}, {pipeline_mode = #tpu.pipeline_mode<synchronous>, transform_indices = @transform_4, window_bounds = array<i64: 1, 32>}, {pipeline_mode = #tpu.pipeline_mode<synchronous>, transform_indices = @transform_5, window_bounds = array<i64: 8, 2, 64>}]} {
    %c0 = arith.constant 0 : index
    %c0_0 = arith.constant 0 : index
    %0 = vector.load %arg2[%c0, %c0_0] : memref<32x96xf32, #tpu.memory_space<vmem>>, vector<32x96xf32>
    %c0_1 = arith.constant 0 : index
    %c0_2 = arith.constant 0 : index
    %1 = vector.load %arg3[%c0_1, %c0_2] : memref<32x96xf32, #tpu.memory_space<vmem>>, vector<32x96xf32>
    %c0_3 = arith.constant 0 : index
    %c0_4 = arith.constant 0 : index
    %2 = vector.load %arg4[%c0_3, %c0_4] : memref<1x32xf32, #tpu.memory_space<vmem>>, vector<1x32xf32>
    %c0_5 = arith.constant 0 : index
    %c0_6 = arith.constant 0 : index
    %3 = vector.load %arg5[%c0_5, %c0_6] : memref<1x32xf32, #tpu.memory_space<vmem>>, vector<1x32xf32>
    %cst = arith.constant 0.000000e+00 : f32
    %4 = vector.broadcast %cst : f32 to vector<2x32xf32>
    %cst_7 = arith.constant 0.000000e+00 : f32
    %5 = vector.broadcast %cst_7 : f32 to vector<2x32xf32>
    %c0_8 = arith.constant 0 : index
    %c0_9 = arith.constant 0 : index
    %c0_10 = arith.constant 0 : index
    %6 = vector.load %arg1[%c0_8, %c0_9, %c0_10] : memref<8x2x192xf32, #tpu.memory_space<vmem>>, vector<1x2x192xf32>
    %7 = vector.shape_cast %6 : vector<1x2x192xf32> to vector<2x192xf32>
    %c7 = arith.constant 7 : index
    %c0_11 = arith.constant 0 : index
    %c0_12 = arith.constant 0 : index
    %8 = vector.load %arg1[%c7, %c0_11, %c0_12] : memref<8x2x192xf32, #tpu.memory_space<vmem>>, vector<1x2x192xf32>
    %9 = vector.shape_cast %8 : vector<1x2x192xf32> to vector<2x192xf32>
    %10 = vector.extract_strided_slice %7 {offsets = [0, 0], sizes = [2, 96], strides = [1, 1]} : vector<2x192xf32> to vector<2x96xf32>
    %cst_13 = arith.constant dense<0.000000e+00> : vector<2x96xf32>
    %11 = tpu.matmul %4, %0, %cst_13 {dimension_numbers = #tpu.dot_dimension_numbers<[1], [0], [0], [1], [0, 0, 1, 1], [], []>} : vector<2x32xf32>, vector<32x96xf32>, vector<2x96xf32> -> vector<2x96xf32>
    %12 = vector.extract_strided_slice %10 {offsets = [0, 0], sizes = [2, 32], strides = [1, 1]} : vector<2x96xf32> to vector<2x32xf32>
    %13 = vector.extract_strided_slice %11 {offsets = [0, 0], sizes = [2, 32], strides = [1, 1]} : vector<2x96xf32> to vector<2x32xf32>
    %14 = arith.addf %12, %13 : vector<2x32xf32>
    %15 = arith.negf %14 : vector<2x32xf32>
    %16 = math.exp %15 : vector<2x32xf32>
    %cst_14 = arith.constant 1.000000e+00 : f32
    %17 = vector.broadcast %cst_14 : f32 to vector<2x32xf32>
    %18 = arith.addf %17, %16 : vector<2x32xf32>
    %19 = arith.divf %17, %18 : vector<2x32xf32>
    %20 = vector.extract_strided_slice %10 {offsets = [0, 32], sizes = [2, 32], strides = [1, 1]} : vector<2x96xf32> to vector<2x32xf32>
    %21 = vector.extract_strided_slice %11 {offsets = [0, 32], sizes = [2, 32], strides = [1, 1]} : vector<2x96xf32> to vector<2x32xf32>
    %22 = arith.addf %20, %21 : vector<2x32xf32>
    %23 = arith.negf %22 : vector<2x32xf32>
    %24 = math.exp %23 : vector<2x32xf32>
    %cst_15 = arith.constant 1.000000e+00 : f32
    %25 = vector.broadcast %cst_15 : f32 to vector<2x32xf32>
    %26 = arith.addf %25, %24 : vector<2x32xf32>
    %27 = arith.divf %25, %26 : vector<2x32xf32>
    %28 = vector.extract_strided_slice %10 {offsets = [0, 64], sizes = [2, 32], strides = [1, 1]} : vector<2x96xf32> to vector<2x32xf32>
    %29 = vector.extract_strided_slice %11 {offsets = [0, 64], sizes = [2, 32], strides = [1, 1]} : vector<2x96xf32> to vector<2x32xf32>
    %30 = vector.broadcast %2 : vector<1x32xf32> to vector<2x32xf32>
    %31 = arith.addf %29, %30 : vector<2x32xf32>
    %32 = arith.mulf %19, %31 : vector<2x32xf32>
    %33 = arith.addf %28, %32 : vector<2x32xf32>
    %34 = math.tanh %33 : vector<2x32xf32>
    %cst_16 = arith.constant 1.000000e+00 : f32
    %35 = vector.broadcast %cst_16 : f32 to vector<2x32xf32>
    %36 = arith.subf %35, %27 : vector<2x32xf32>
    %37 = arith.mulf %36, %34 : vector<2x32xf32>
    %38 = arith.mulf %27, %4 : vector<2x32xf32>
    %39 = arith.addf %37, %38 : vector<2x32xf32>
    %40 = vector.extract_strided_slice %9 {offsets = [0, 96], sizes = [2, 96], strides = [1, 1]} : vector<2x192xf32> to vector<2x96xf32>
    %cst_17 = arith.constant dense<0.000000e+00> : vector<2x96xf32>
    %41 = tpu.matmul %5, %1, %cst_17 {dimension_numbers = #tpu.dot_dimension_numbers<[1], [0], [0], [1], [0, 0, 1, 1], [], []>} : vector<2x32xf32>, vector<32x96xf32>, vector<2x96xf32> -> vector<2x96xf32>
    %42 = vector.extract_strided_slice %40 {offsets = [0, 0], sizes = [2, 32], strides = [1, 1]} : vector<2x96xf32> to vector<2x32xf32>
    %43 = vector.extract_strided_slice %41 {offsets = [0, 0], sizes = [2, 32], strides = [1, 1]} : vector<2x96xf32> to vector<2x32xf32>
    %44 = arith.addf %42, %43 : vector<2x32xf32>
    %45 = arith.negf %44 : vector<2x32xf32>
    %46 = math.exp %45 : vector<2x32xf32>
    %cst_18 = arith.constant 1.000000e+00 : f32
    %47 = vector.broadcast %cst_18 : f32 to vector<2x32xf32>
    %48 = arith.addf %47, %46 : vector<2x32xf32>
    %49 = arith.divf %47, %48 : vector<2x32xf32>
    %50 = vector.extract_strided_slice %40 {offsets = [0, 32], sizes = [2, 32], strides = [1, 1]} : vector<2x96xf32> to vector<2x32xf32>
    %51 = vector.extract_strided_slice %41 {offsets = [0, 32], sizes = [2, 32], strides = [1, 1]} : vector<2x96xf32> to vector<2x32xf32>
    %52 = arith.addf %50, %51 : vector<2x32xf32>
    %53 = arith.negf %52 : vector<2x32xf32>
    %54 = math.exp %53 : vector<2x32xf32>
    %cst_19 = arith.constant 1.000000e+00 : f32
    %55 = vector.broadcast %cst_19 : f32 to vector<2x32xf32>
    %56 = arith.addf %55, %54 : vector<2x32xf32>
    %57 = arith.divf %55, %56 : vector<2x32xf32>
    %58 = vector.extract_strided_slice %40 {offsets = [0, 64], sizes = [2, 32], strides = [1, 1]} : vector<2x96xf32> to vector<2x32xf32>
    %59 = vector.extract_strided_slice %41 {offsets = [0, 64], sizes = [2, 32], strides = [1, 1]} : vector<2x96xf32> to vector<2x32xf32>
    %60 = vector.broadcast %3 : vector<1x32xf32> to vector<2x32xf32>
    %61 = arith.addf %59, %60 : vector<2x32xf32>
    %62 = arith.mulf %49, %61 : vector<2x32xf32>
    %63 = arith.addf %58, %62 : vector<2x32xf32>
    %64 = math.tanh %63 : vector<2x32xf32>
    %cst_20 = arith.constant 1.000000e+00 : f32
    %65 = vector.broadcast %cst_20 : f32 to vector<2x32xf32>
    %66 = arith.subf %65, %57 : vector<2x32xf32>
    %67 = arith.mulf %66, %64 : vector<2x32xf32>
    %68 = arith.mulf %57, %5 : vector<2x32xf32>
    %69 = arith.addf %67, %68 : vector<2x32xf32>
    %c0_21 = arith.constant 0 : index
    %c0_22 = arith.constant 0 : index
    %c0_23 = arith.constant 0 : index
    %70 = vector.load %arg6[%c0_21, %c0_22, %c0_23] : memref<8x2x64xf32, #tpu.memory_space<vmem>>, vector<1x2x32xf32>
    %71 = vector.shape_cast %70 : vector<1x2x32xf32> to vector<2x32xf32>
    %72 = vector.shape_cast %39 : vector<2x32xf32> to vector<1x2x32xf32>
    tpu.vector_store %arg6[%c0_21, %c0_22, %c0_23], %72 {strides = array<i32>} : memref<8x2x64xf32, #tpu.memory_space<vmem>>, vector<1x2x32xf32>,
    %c7_24 = arith.constant 7 : index
    %c0_25 = arith.constant 0 : index
    %c32 = arith.constant 32 : index
    %73 = vector.load %arg6[%c7_24, %c0_25, %c32] : memref<8x2x64xf32, #tpu.memory_space<vmem>>, vector<1x2x32xf32>
    %74 = vector.shape_cast %73 : vector<1x2x32xf32> to vector<2x32xf32>
    %75 = vector.shape_cast %69 : vector<2x32xf32> to vector<1x2x32xf32>
    tpu.vector_store %arg6[%c7_24, %c0_25, %c32], %75 {strides = array<i32>} : memref<8x2x64xf32, #tpu.memory_space<vmem>>, vector<1x2x32xf32>,
    %c1 = arith.constant 1 : index
    %c0_26 = arith.constant 0 : index
    %c0_27 = arith.constant 0 : index
    %76 = vector.load %arg1[%c1, %c0_26, %c0_27] : memref<8x2x192xf32, #tpu.memory_space<vmem>>, vector<1x2x192xf32>
    %77 = vector.shape_cast %76 : vector<1x2x192xf32> to vector<2x192xf32>
    %c6 = arith.constant 6 : index
    %c0_28 = arith.constant 0 : index
    %c0_29 = arith.constant 0 : index
    %78 = vector.load %arg1[%c6, %c0_28, %c0_29] : memref<8x2x192xf32, #tpu.memory_space<vmem>>, vector<1x2x192xf32>
    %79 = vector.shape_cast %78 : vector<1x2x192xf32> to vector<2x192xf32>
    %80 = vector.extract_strided_slice %77 {offsets = [0, 0], sizes = [2, 96], strides = [1, 1]} : vector<2x192xf32> to vector<2x96xf32>
    %cst_30 = arith.constant dense<0.000000e+00> : vector<2x96xf32>
    %81 = tpu.matmul %39, %0, %cst_30 {dimension_numbers = #tpu.dot_dimension_numbers<[1], [0], [0], [1], [0, 0, 1, 1], [], []>} : vector<2x32xf32>, vector<32x96xf32>, vector<2x96xf32> -> vector<2x96xf32>
    %82 = vector.extract_strided_slice %80 {offsets = [0, 0], sizes = [2, 32], strides = [1, 1]} : vector<2x96xf32> to vector<2x32xf32>
    %83 = vector.extract_strided_slice %81 {offsets = [0, 0], sizes = [2, 32], strides = [1, 1]} : vector<2x96xf32> to vector<2x32xf32>
    %84 = arith.addf %82, %83 : vector<2x32xf32>
    %85 = arith.negf %84 : vector<2x32xf32>
    %86 = math.exp %85 : vector<2x32xf32>
    %cst_31 = arith.constant 1.000000e+00 : f32
    %87 = vector.broadcast %cst_31 : f32 to vector<2x32xf32>
    %88 = arith.addf %87, %86 : vector<2x32xf32>
    %89 = arith.divf %87, %88 : vector<2x32xf32>
    %90 = vector.extract_strided_slice %80 {offsets = [0, 32], sizes = [2, 32], strides = [1, 1]} : vector<2x96xf32> to vector<2x32xf32>
    %91 = vector.extract_strided_slice %81 {offsets = [0, 32], sizes = [2, 32], strides = [1, 1]} : vector<2x96xf32> to vector<2x32xf32>
    %92 = arith.addf %90, %91 : vector<2x32xf32>
    %93 = arith.negf %92 : vector<2x32xf32>
    %94 = math.exp %93 : vector<2x32xf32>
    %cst_32 = arith.constant 1.000000e+00 : f32
    %95 = vector.broadcast %cst_32 : f32 to vector<2x32xf32>
    %96 = arith.addf %95, %94 : vector<2x32xf32>
    %97 = arith.divf %95, %96 : vector<2x32xf32>
    %98 = vector.extract_strided_slice %80 {offsets = [0, 64], sizes = [2, 32], strides = [1, 1]} : vector<2x96xf32> to vector<2x32xf32>
    %99 = vector.extract_strided_slice %81 {offsets = [0, 64], sizes = [2, 32], strides = [1, 1]} : vector<2x96xf32> to vector<2x32xf32>
    %100 = vector.broadcast %2 : vector<1x32xf32> to vector<2x32xf32>
    %101 = arith.addf %99, %100 : vector<2x32xf32>
    %102 = arith.mulf %89, %101 : vector<2x32xf32>
    %103 = arith.addf %98, %102 : vector<2x32xf32>
    %104 = math.tanh %103 : vector<2x32xf32>
    %cst_33 = arith.constant 1.000000e+00 : f32
    %105 = vector.broadcast %cst_33 : f32 to vector<2x32xf32>
    %106 = arith.subf %105, %97 : vector<2x32xf32>
    %107 = arith.mulf %106, %104 : vector<2x32xf32>
    %108 = arith.mulf %97, %39 : vector<2x32xf32>
    %109 = arith.addf %107, %108 : vector<2x32xf32>
    %110 = vector.extract_strided_slice %79 {offsets = [0, 96], sizes = [2, 96], strides = [1, 1]} : vector<2x192xf32> to vector<2x96xf32>
    %cst_34 = arith.constant dense<0.000000e+00> : vector<2x96xf32>
    %111 = tpu.matmul %69, %1, %cst_34 {dimension_numbers = #tpu.dot_dimension_numbers<[1], [0], [0], [1], [0, 0, 1, 1], [], []>} : vector<2x32xf32>, vector<32x96xf32>, vector<2x96xf32> -> vector<2x96xf32>
    %112 = vector.extract_strided_slice %110 {offsets = [0, 0], sizes = [2, 32], strides = [1, 1]} : vector<2x96xf32> to vector<2x32xf32>
    %113 = vector.extract_strided_slice %111 {offsets = [0, 0], sizes = [2, 32], strides = [1, 1]} : vector<2x96xf32> to vector<2x32xf32>
    %114 = arith.addf %112, %113 : vector<2x32xf32>
    %115 = arith.negf %114 : vector<2x32xf32>
    %116 = math.exp %115 : vector<2x32xf32>
    %cst_35 = arith.constant 1.000000e+00 : f32
    %117 = vector.broadcast %cst_35 : f32 to vector<2x32xf32>
    %118 = arith.addf %117, %116 : vector<2x32xf32>
    %119 = arith.divf %117, %118 : vector<2x32xf32>
    %120 = vector.extract_strided_slice %110 {offsets = [0, 32], sizes = [2, 32], strides = [1, 1]} : vector<2x96xf32> to vector<2x32xf32>
    %121 = vector.extract_strided_slice %111 {offsets = [0, 32], sizes = [2, 32], strides = [1, 1]} : vector<2x96xf32> to vector<2x32xf32>
    %122 = arith.addf %120, %121 : vector<2x32xf32>
    %123 = arith.negf %122 : vector<2x32xf32>
    %124 = math.exp %123 : vector<2x32xf32>
    %cst_36 = arith.constant 1.000000e+00 : f32
    %125 = vector.broadcast %cst_36 : f32 to vector<2x32xf32>
    %126 = arith.addf %125, %124 : vector<2x32xf32>
    %127 = arith.divf %125, %126 : vector<2x32xf32>
    %128 = vector.extract_strided_slice %110 {offsets = [0, 64], sizes = [2, 32], strides = [1, 1]} : vector<2x96xf32> to vector<2x32xf32>
    %129 = vector.extract_strided_slice %111 {offsets = [0, 64], sizes = [2, 32], strides = [1, 1]} : vector<2x96xf32> to vector<2x32xf32>
    %130 = vector.broadcast %3 : vector<1x32xf32> to vector<2x32xf32>
    %131 = arith.addf %129, %130 : vector<2x32xf32>
    %132 = arith.mulf %119, %131 : vector<2x32xf32>
    %133 = arith.addf %128, %132 : vector<2x32xf32>
    %134 = math.tanh %133 : vector<2x32xf32>
    %cst_37 = arith.constant 1.000000e+00 : f32
    %135 = vector.broadcast %cst_37 : f32 to vector<2x32xf32>
    %136 = arith.subf %135, %127 : vector<2x32xf32>
    %137 = arith.mulf %136, %134 : vector<2x32xf32>
    %138 = arith.mulf %127, %69 : vector<2x32xf32>
    %139 = arith.addf %137, %138 : vector<2x32xf32>
    %c1_38 = arith.constant 1 : index
    %c0_39 = arith.constant 0 : index
    %c0_40 = arith.constant 0 : index
    %140 = vector.load %arg6[%c1_38, %c0_39, %c0_40] : memref<8x2x64xf32, #tpu.memory_space<vmem>>, vector<1x2x32xf32>
    %141 = vector.shape_cast %140 : vector<1x2x32xf32> to vector<2x32xf32>
    %142 = vector.shape_cast %109 : vector<2x32xf32> to vector<1x2x32xf32>
    tpu.vector_store %arg6[%c1_38, %c0_39, %c0_40], %142 {strides = array<i32>} : memref<8x2x64xf32, #tpu.memory_space<vmem>>, vector<1x2x32xf32>,
    %c6_41 = arith.constant 6 : index
    %c0_42 = arith.constant 0 : index
    %c32_43 = arith.constant 32 : index
    %143 = vector.load %arg6[%c6_41, %c0_42, %c32_43] : memref<8x2x64xf32, #tpu.memory_space<vmem>>, vector<1x2x32xf32>
    %144 = vector.shape_cast %143 : vector<1x2x32xf32> to vector<2x32xf32>
    %145 = vector.shape_cast %139 : vector<2x32xf32> to vector<1x2x32xf32>
    tpu.vector_store %arg6[%c6_41, %c0_42, %c32_43], %145 {strides = array<i32>} : memref<8x2x64xf32, #tpu.memory_space<vmem>>, vector<1x2x32xf32>,
    %c2 = arith.constant 2 : index
    %c0_44 = arith.constant 0 : index
    %c0_45 = arith.constant 0 : index
    %146 = vector.load %arg1[%c2, %c0_44, %c0_45] : memref<8x2x192xf32, #tpu.memory_space<vmem>>, vector<1x2x192xf32>
    %147 = vector.shape_cast %146 : vector<1x2x192xf32> to vector<2x192xf32>
    %c5 = arith.constant 5 : index
    %c0_46 = arith.constant 0 : index
    %c0_47 = arith.constant 0 : index
    %148 = vector.load %arg1[%c5, %c0_46, %c0_47] : memref<8x2x192xf32, #tpu.memory_space<vmem>>, vector<1x2x192xf32>
    %149 = vector.shape_cast %148 : vector<1x2x192xf32> to vector<2x192xf32>
    %150 = vector.extract_strided_slice %147 {offsets = [0, 0], sizes = [2, 96], strides = [1, 1]} : vector<2x192xf32> to vector<2x96xf32>
    %cst_48 = arith.constant dense<0.000000e+00> : vector<2x96xf32>
    %151 = tpu.matmul %109, %0, %cst_48 {dimension_numbers = #tpu.dot_dimension_numbers<[1], [0], [0], [1], [0, 0, 1, 1], [], []>} : vector<2x32xf32>, vector<32x96xf32>, vector<2x96xf32> -> vector<2x96xf32>
    %152 = vector.extract_strided_slice %150 {offsets = [0, 0], sizes = [2, 32], strides = [1, 1]} : vector<2x96xf32> to vector<2x32xf32>
    %153 = vector.extract_strided_slice %151 {offsets = [0, 0], sizes = [2, 32], strides = [1, 1]} : vector<2x96xf32> to vector<2x32xf32>
    %154 = arith.addf %152, %153 : vector<2x32xf32>
    %155 = arith.negf %154 : vector<2x32xf32>
    %156 = math.exp %155 : vector<2x32xf32>
    %cst_49 = arith.constant 1.000000e+00 : f32
    %157 = vector.broadcast %cst_49 : f32 to vector<2x32xf32>
    %158 = arith.addf %157, %156 : vector<2x32xf32>
    %159 = arith.divf %157, %158 : vector<2x32xf32>
    %160 = vector.extract_strided_slice %150 {offsets = [0, 32], sizes = [2, 32], strides = [1, 1]} : vector<2x96xf32> to vector<2x32xf32>
    %161 = vector.extract_strided_slice %151 {offsets = [0, 32], sizes = [2, 32], strides = [1, 1]} : vector<2x96xf32> to vector<2x32xf32>
    %162 = arith.addf %160, %161 : vector<2x32xf32>
    %163 = arith.negf %162 : vector<2x32xf32>
    %164 = math.exp %163 : vector<2x32xf32>
    %cst_50 = arith.constant 1.000000e+00 : f32
    %165 = vector.broadcast %cst_50 : f32 to vector<2x32xf32>
    %166 = arith.addf %165, %164 : vector<2x32xf32>
    %167 = arith.divf %165, %166 : vector<2x32xf32>
    %168 = vector.extract_strided_slice %150 {offsets = [0, 64], sizes = [2, 32], strides = [1, 1]} : vector<2x96xf32> to vector<2x32xf32>
    %169 = vector.extract_strided_slice %151 {offsets = [0, 64], sizes = [2, 32], strides = [1, 1]} : vector<2x96xf32> to vector<2x32xf32>
    %170 = vector.broadcast %2 : vector<1x32xf32> to vector<2x32xf32>
    %171 = arith.addf %169, %170 : vector<2x32xf32>
    %172 = arith.mulf %159, %171 : vector<2x32xf32>
    %173 = arith.addf %168, %172 : vector<2x32xf32>
    %174 = math.tanh %173 : vector<2x32xf32>
    %cst_51 = arith.constant 1.000000e+00 : f32
    %175 = vector.broadcast %cst_51 : f32 to vector<2x32xf32>
    %176 = arith.subf %175, %167 : vector<2x32xf32>
    %177 = arith.mulf %176, %174 : vector<2x32xf32>
    %178 = arith.mulf %167, %109 : vector<2x32xf32>
    %179 = arith.addf %177, %178 : vector<2x32xf32>
    %180 = vector.extract_strided_slice %149 {offsets = [0, 96], sizes = [2, 96], strides = [1, 1]} : vector<2x192xf32> to vector<2x96xf32>
    %cst_52 = arith.constant dense<0.000000e+00> : vector<2x96xf32>
    %181 = tpu.matmul %139, %1, %cst_52 {dimension_numbers = #tpu.dot_dimension_numbers<[1], [0], [0], [1], [0, 0, 1, 1], [], []>} : vector<2x32xf32>, vector<32x96xf32>, vector<2x96xf32> -> vector<2x96xf32>
    %182 = vector.extract_strided_slice %180 {offsets = [0, 0], sizes = [2, 32], strides = [1, 1]} : vector<2x96xf32> to vector<2x32xf32>
    %183 = vector.extract_strided_slice %181 {offsets = [0, 0], sizes = [2, 32], strides = [1, 1]} : vector<2x96xf32> to vector<2x32xf32>
    %184 = arith.addf %182, %183 : vector<2x32xf32>
    %185 = arith.negf %184 : vector<2x32xf32>
    %186 = math.exp %185 : vector<2x32xf32>
    %cst_53 = arith.constant 1.000000e+00 : f32
    %187 = vector.broadcast %cst_53 : f32 to vector<2x32xf32>
    %188 = arith.addf %187, %186 : vector<2x32xf32>
    %189 = arith.divf %187, %188 : vector<2x32xf32>
    %190 = vector.extract_strided_slice %180 {offsets = [0, 32], sizes = [2, 32], strides = [1, 1]} : vector<2x96xf32> to vector<2x32xf32>
    %191 = vector.extract_strided_slice %181 {offsets = [0, 32], sizes = [2, 32], strides = [1, 1]} : vector<2x96xf32> to vector<2x32xf32>
    %192 = arith.addf %190, %191 : vector<2x32xf32>
    %193 = arith.negf %192 : vector<2x32xf32>
    %194 = math.exp %193 : vector<2x32xf32>
    %cst_54 = arith.constant 1.000000e+00 : f32
    %195 = vector.broadcast %cst_54 : f32 to vector<2x32xf32>
    %196 = arith.addf %195, %194 : vector<2x32xf32>
    %197 = arith.divf %195, %196 : vector<2x32xf32>
    %198 = vector.extract_strided_slice %180 {offsets = [0, 64], sizes = [2, 32], strides = [1, 1]} : vector<2x96xf32> to vector<2x32xf32>
    %199 = vector.extract_strided_slice %181 {offsets = [0, 64], sizes = [2, 32], strides = [1, 1]} : vector<2x96xf32> to vector<2x32xf32>
    %200 = vector.broadcast %3 : vector<1x32xf32> to vector<2x32xf32>
    %201 = arith.addf %199, %200 : vector<2x32xf32>
    %202 = arith.mulf %189, %201 : vector<2x32xf32>
    %203 = arith.addf %198, %202 : vector<2x32xf32>
    %204 = math.tanh %203 : vector<2x32xf32>
    %cst_55 = arith.constant 1.000000e+00 : f32
    %205 = vector.broadcast %cst_55 : f32 to vector<2x32xf32>
    %206 = arith.subf %205, %197 : vector<2x32xf32>
    %207 = arith.mulf %206, %204 : vector<2x32xf32>
    %208 = arith.mulf %197, %139 : vector<2x32xf32>
    %209 = arith.addf %207, %208 : vector<2x32xf32>
    %c2_56 = arith.constant 2 : index
    %c0_57 = arith.constant 0 : index
    %c0_58 = arith.constant 0 : index
    %210 = vector.load %arg6[%c2_56, %c0_57, %c0_58] : memref<8x2x64xf32, #tpu.memory_space<vmem>>, vector<1x2x32xf32>
    %211 = vector.shape_cast %210 : vector<1x2x32xf32> to vector<2x32xf32>
    %212 = vector.shape_cast %179 : vector<2x32xf32> to vector<1x2x32xf32>
    tpu.vector_store %arg6[%c2_56, %c0_57, %c0_58], %212 {strides = array<i32>} : memref<8x2x64xf32, #tpu.memory_space<vmem>>, vector<1x2x32xf32>,
    %c5_59 = arith.constant 5 : index
    %c0_60 = arith.constant 0 : index
    %c32_61 = arith.constant 32 : index
    %213 = vector.load %arg6[%c5_59, %c0_60, %c32_61] : memref<8x2x64xf32, #tpu.memory_space<vmem>>, vector<1x2x32xf32>
    %214 = vector.shape_cast %213 : vector<1x2x32xf32> to vector<2x32xf32>
    %215 = vector.shape_cast %209 : vector<2x32xf32> to vector<1x2x32xf32>
    tpu.vector_store %arg6[%c5_59, %c0_60, %c32_61], %215 {strides = array<i32>} : memref<8x2x64xf32, #tpu.memory_space<vmem>>, vector<1x2x32xf32>,
    %c3 = arith.constant 3 : index
    %c0_62 = arith.constant 0 : index
    %c0_63 = arith.constant 0 : index
    %216 = vector.load %arg1[%c3, %c0_62, %c0_63] : memref<8x2x192xf32, #tpu.memory_space<vmem>>, vector<1x2x192xf32>
    %217 = vector.shape_cast %216 : vector<1x2x192xf32> to vector<2x192xf32>
    %c4 = arith.constant 4 : index
    %c0_64 = arith.constant 0 : index
    %c0_65 = arith.constant 0 : index
    %218 = vector.load %arg1[%c4, %c0_64, %c0_65] : memref<8x2x192xf32, #tpu.memory_space<vmem>>, vector<1x2x192xf32>
    %219 = vector.shape_cast %218 : vector<1x2x192xf32> to vector<2x192xf32>
    %220 = vector.extract_strided_slice %217 {offsets = [0, 0], sizes = [2, 96], strides = [1, 1]} : vector<2x192xf32> to vector<2x96xf32>
    %cst_66 = arith.constant dense<0.000000e+00> : vector<2x96xf32>
    %221 = tpu.matmul %179, %0, %cst_66 {dimension_numbers = #tpu.dot_dimension_numbers<[1], [0], [0], [1], [0, 0, 1, 1], [], []>} : vector<2x32xf32>, vector<32x96xf32>, vector<2x96xf32> -> vector<2x96xf32>
    %222 = vector.extract_strided_slice %220 {offsets = [0, 0], sizes = [2, 32], strides = [1, 1]} : vector<2x96xf32> to vector<2x32xf32>
    %223 = vector.extract_strided_slice %221 {offsets = [0, 0], sizes = [2, 32], strides = [1, 1]} : vector<2x96xf32> to vector<2x32xf32>
    %224 = arith.addf %222, %223 : vector<2x32xf32>
    %225 = arith.negf %224 : vector<2x32xf32>
    %226 = math.exp %225 : vector<2x32xf32>
    %cst_67 = arith.constant 1.000000e+00 : f32
    %227 = vector.broadcast %cst_67 : f32 to vector<2x32xf32>
    %228 = arith.addf %227, %226 : vector<2x32xf32>
    %229 = arith.divf %227, %228 : vector<2x32xf32>
    %230 = vector.extract_strided_slice %220 {offsets = [0, 32], sizes = [2, 32], strides = [1, 1]} : vector<2x96xf32> to vector<2x32xf32>
    %231 = vector.extract_strided_slice %221 {offsets = [0, 32], sizes = [2, 32], strides = [1, 1]} : vector<2x96xf32> to vector<2x32xf32>
    %232 = arith.addf %230, %231 : vector<2x32xf32>
    %233 = arith.negf %232 : vector<2x32xf32>
    %234 = math.exp %233 : vector<2x32xf32>
    %cst_68 = arith.constant 1.000000e+00 : f32
    %235 = vector.broadcast %cst_68 : f32 to vector<2x32xf32>
    %236 = arith.addf %235, %234 : vector<2x32xf32>
    %237 = arith.divf %235, %236 : vector<2x32xf32>
    %238 = vector.extract_strided_slice %220 {offsets = [0, 64], sizes = [2, 32], strides = [1, 1]} : vector<2x96xf32> to vector<2x32xf32>
    %239 = vector.extract_strided_slice %221 {offsets = [0, 64], sizes = [2, 32], strides = [1, 1]} : vector<2x96xf32> to vector<2x32xf32>
    %240 = vector.broadcast %2 : vector<1x32xf32> to vector<2x32xf32>
    %241 = arith.addf %239, %240 : vector<2x32xf32>
    %242 = arith.mulf %229, %241 : vector<2x32xf32>
    %243 = arith.addf %238, %242 : vector<2x32xf32>
    %244 = math.tanh %243 : vector<2x32xf32>
    %cst_69 = arith.constant 1.000000e+00 : f32
    %245 = vector.broadcast %cst_69 : f32 to vector<2x32xf32>
    %246 = arith.subf %245, %237 : vector<2x32xf32>
    %247 = arith.mulf %246, %244 : vector<2x32xf32>
    %248 = arith.mulf %237, %179 : vector<2x32xf32>
    %249 = arith.addf %247, %248 : vector<2x32xf32>
    %250 = vector.extract_strided_slice %219 {offsets = [0, 96], sizes = [2, 96], strides = [1, 1]} : vector<2x192xf32> to vector<2x96xf32>
    %cst_70 = arith.constant dense<0.000000e+00> : vector<2x96xf32>
    %251 = tpu.matmul %209, %1, %cst_70 {dimension_numbers = #tpu.dot_dimension_numbers<[1], [0], [0], [1], [0, 0, 1, 1], [], []>} : vector<2x32xf32>, vector<32x96xf32>, vector<2x96xf32> -> vector<2x96xf32>
    %252 = vector.extract_strided_slice %250 {offsets = [0, 0], sizes = [2, 32], strides = [1, 1]} : vector<2x96xf32> to vector<2x32xf32>
    %253 = vector.extract_strided_slice %251 {offsets = [0, 0], sizes = [2, 32], strides = [1, 1]} : vector<2x96xf32> to vector<2x32xf32>
    %254 = arith.addf %252, %253 : vector<2x32xf32>
    %255 = arith.negf %254 : vector<2x32xf32>
    %256 = math.exp %255 : vector<2x32xf32>
    %cst_71 = arith.constant 1.000000e+00 : f32
    %257 = vector.broadcast %cst_71 : f32 to vector<2x32xf32>
    %258 = arith.addf %257, %256 : vector<2x32xf32>
    %259 = arith.divf %257, %258 : vector<2x32xf32>
    %260 = vector.extract_strided_slice %250 {offsets = [0, 32], sizes = [2, 32], strides = [1, 1]} : vector<2x96xf32> to vector<2x32xf32>
    %261 = vector.extract_strided_slice %251 {offsets = [0, 32], sizes = [2, 32], strides = [1, 1]} : vector<2x96xf32> to vector<2x32xf32>
    %262 = arith.addf %260, %261 : vector<2x32xf32>
    %263 = arith.negf %262 : vector<2x32xf32>
    %264 = math.exp %263 : vector<2x32xf32>
    %cst_72 = arith.constant 1.000000e+00 : f32
    %265 = vector.broadcast %cst_72 : f32 to vector<2x32xf32>
    %266 = arith.addf %265, %264 : vector<2x32xf32>
    %267 = arith.divf %265, %266 : vector<2x32xf32>
    %268 = vector.extract_strided_slice %250 {offsets = [0, 64], sizes = [2, 32], strides = [1, 1]} : vector<2x96xf32> to vector<2x32xf32>
    %269 = vector.extract_strided_slice %251 {offsets = [0, 64], sizes = [2, 32], strides = [1, 1]} : vector<2x96xf32> to vector<2x32xf32>
    %270 = vector.broadcast %3 : vector<1x32xf32> to vector<2x32xf32>
    %271 = arith.addf %269, %270 : vector<2x32xf32>
    %272 = arith.mulf %259, %271 : vector<2x32xf32>
    %273 = arith.addf %268, %272 : vector<2x32xf32>
    %274 = math.tanh %273 : vector<2x32xf32>
    %cst_73 = arith.constant 1.000000e+00 : f32
    %275 = vector.broadcast %cst_73 : f32 to vector<2x32xf32>
    %276 = arith.subf %275, %267 : vector<2x32xf32>
    %277 = arith.mulf %276, %274 : vector<2x32xf32>
    %278 = arith.mulf %267, %209 : vector<2x32xf32>
    %279 = arith.addf %277, %278 : vector<2x32xf32>
    %c3_74 = arith.constant 3 : index
    %c0_75 = arith.constant 0 : index
    %c0_76 = arith.constant 0 : index
    %280 = vector.load %arg6[%c3_74, %c0_75, %c0_76] : memref<8x2x64xf32, #tpu.memory_space<vmem>>, vector<1x2x32xf32>
    %281 = vector.shape_cast %280 : vector<1x2x32xf32> to vector<2x32xf32>
    %282 = vector.shape_cast %249 : vector<2x32xf32> to vector<1x2x32xf32>
    tpu.vector_store %arg6[%c3_74, %c0_75, %c0_76], %282 {strides = array<i32>} : memref<8x2x64xf32, #tpu.memory_space<vmem>>, vector<1x2x32xf32>,
    %c4_77 = arith.constant 4 : index
    %c0_78 = arith.constant 0 : index
    %c32_79 = arith.constant 32 : index
    %283 = vector.load %arg6[%c4_77, %c0_78, %c32_79] : memref<8x2x64xf32, #tpu.memory_space<vmem>>, vector<1x2x32xf32>
    %284 = vector.shape_cast %283 : vector<1x2x32xf32> to vector<2x32xf32>
    %285 = vector.shape_cast %279 : vector<2x32xf32> to vector<1x2x32xf32>
    tpu.vector_store %arg6[%c4_77, %c0_78, %c32_79], %285 {strides = array<i32>} : memref<8x2x64xf32, #tpu.memory_space<vmem>>, vector<1x2x32xf32>,
    %c4_80 = arith.constant 4 : index
    %c0_81 = arith.constant 0 : index
    %c0_82 = arith.constant 0 : index
    %286 = vector.load %arg1[%c4_80, %c0_81, %c0_82] : memref<8x2x192xf32, #tpu.memory_space<vmem>>, vector<1x2x192xf32>
    %287 = vector.shape_cast %286 : vector<1x2x192xf32> to vector<2x192xf32>
    %c3_83 = arith.constant 3 : index
    %c0_84 = arith.constant 0 : index
    %c0_85 = arith.constant 0 : index
    %288 = vector.load %arg1[%c3_83, %c0_84, %c0_85] : memref<8x2x192xf32, #tpu.memory_space<vmem>>, vector<1x2x192xf32>
    %289 = vector.shape_cast %288 : vector<1x2x192xf32> to vector<2x192xf32>
    %290 = vector.extract_strided_slice %287 {offsets = [0, 0], sizes = [2, 96], strides = [1, 1]} : vector<2x192xf32> to vector<2x96xf32>
    %cst_86 = arith.constant dense<0.000000e+00> : vector<2x96xf32>
    %291 = tpu.matmul %249, %0, %cst_86 {dimension_numbers = #tpu.dot_dimension_numbers<[1], [0], [0], [1], [0, 0, 1, 1], [], []>} : vector<2x32xf32>, vector<32x96xf32>, vector<2x96xf32> -> vector<2x96xf32>
    %292 = vector.extract_strided_slice %290 {offsets = [0, 0], sizes = [2, 32], strides = [1, 1]} : vector<2x96xf32> to vector<2x32xf32>
    %293 = vector.extract_strided_slice %291 {offsets = [0, 0], sizes = [2, 32], strides = [1, 1]} : vector<2x96xf32> to vector<2x32xf32>
    %294 = arith.addf %292, %293 : vector<2x32xf32>
    %295 = arith.negf %294 : vector<2x32xf32>
    %296 = math.exp %295 : vector<2x32xf32>
    %cst_87 = arith.constant 1.000000e+00 : f32
    %297 = vector.broadcast %cst_87 : f32 to vector<2x32xf32>
    %298 = arith.addf %297, %296 : vector<2x32xf32>
    %299 = arith.divf %297, %298 : vector<2x32xf32>
    %300 = vector.extract_strided_slice %290 {offsets = [0, 32], sizes = [2, 32], strides = [1, 1]} : vector<2x96xf32> to vector<2x32xf32>
    %301 = vector.extract_strided_slice %291 {offsets = [0, 32], sizes = [2, 32], strides = [1, 1]} : vector<2x96xf32> to vector<2x32xf32>
    %302 = arith.addf %300, %301 : vector<2x32xf32>
    %303 = arith.negf %302 : vector<2x32xf32>
    %304 = math.exp %303 : vector<2x32xf32>
    %cst_88 = arith.constant 1.000000e+00 : f32
    %305 = vector.broadcast %cst_88 : f32 to vector<2x32xf32>
    %306 = arith.addf %305, %304 : vector<2x32xf32>
    %307 = arith.divf %305, %306 : vector<2x32xf32>
    %308 = vector.extract_strided_slice %290 {offsets = [0, 64], sizes = [2, 32], strides = [1, 1]} : vector<2x96xf32> to vector<2x32xf32>
    %309 = vector.extract_strided_slice %291 {offsets = [0, 64], sizes = [2, 32], strides = [1, 1]} : vector<2x96xf32> to vector<2x32xf32>
    %310 = vector.broadcast %2 : vector<1x32xf32> to vector<2x32xf32>
    %311 = arith.addf %309, %310 : vector<2x32xf32>
    %312 = arith.mulf %299, %311 : vector<2x32xf32>
    %313 = arith.addf %308, %312 : vector<2x32xf32>
    %314 = math.tanh %313 : vector<2x32xf32>
    %cst_89 = arith.constant 1.000000e+00 : f32
    %315 = vector.broadcast %cst_89 : f32 to vector<2x32xf32>
    %316 = arith.subf %315, %307 : vector<2x32xf32>
    %317 = arith.mulf %316, %314 : vector<2x32xf32>
    %318 = arith.mulf %307, %249 : vector<2x32xf32>
    %319 = arith.addf %317, %318 : vector<2x32xf32>
    %320 = vector.extract_strided_slice %289 {offsets = [0, 96], sizes = [2, 96], strides = [1, 1]} : vector<2x192xf32> to vector<2x96xf32>
    %cst_90 = arith.constant dense<0.000000e+00> : vector<2x96xf32>
    %321 = tpu.matmul %279, %1, %cst_90 {dimension_numbers = #tpu.dot_dimension_numbers<[1], [0], [0], [1], [0, 0, 1, 1], [], []>} : vector<2x32xf32>, vector<32x96xf32>, vector<2x96xf32> -> vector<2x96xf32>
    %322 = vector.extract_strided_slice %320 {offsets = [0, 0], sizes = [2, 32], strides = [1, 1]} : vector<2x96xf32> to vector<2x32xf32>
    %323 = vector.extract_strided_slice %321 {offsets = [0, 0], sizes = [2, 32], strides = [1, 1]} : vector<2x96xf32> to vector<2x32xf32>
    %324 = arith.addf %322, %323 : vector<2x32xf32>
    %325 = arith.negf %324 : vector<2x32xf32>
    %326 = math.exp %325 : vector<2x32xf32>
    %cst_91 = arith.constant 1.000000e+00 : f32
    %327 = vector.broadcast %cst_91 : f32 to vector<2x32xf32>
    %328 = arith.addf %327, %326 : vector<2x32xf32>
    %329 = arith.divf %327, %328 : vector<2x32xf32>
    %330 = vector.extract_strided_slice %320 {offsets = [0, 32], sizes = [2, 32], strides = [1, 1]} : vector<2x96xf32> to vector<2x32xf32>
    %331 = vector.extract_strided_slice %321 {offsets = [0, 32], sizes = [2, 32], strides = [1, 1]} : vector<2x96xf32> to vector<2x32xf32>
    %332 = arith.addf %330, %331 : vector<2x32xf32>
    %333 = arith.negf %332 : vector<2x32xf32>
    %334 = math.exp %333 : vector<2x32xf32>
    %cst_92 = arith.constant 1.000000e+00 : f32
    %335 = vector.broadcast %cst_92 : f32 to vector<2x32xf32>
    %336 = arith.addf %335, %334 : vector<2x32xf32>
    %337 = arith.divf %335, %336 : vector<2x32xf32>
    %338 = vector.extract_strided_slice %320 {offsets = [0, 64], sizes = [2, 32], strides = [1, 1]} : vector<2x96xf32> to vector<2x32xf32>
    %339 = vector.extract_strided_slice %321 {offsets = [0, 64], sizes = [2, 32], strides = [1, 1]} : vector<2x96xf32> to vector<2x32xf32>
    %340 = vector.broadcast %3 : vector<1x32xf32> to vector<2x32xf32>
    %341 = arith.addf %339, %340 : vector<2x32xf32>
    %342 = arith.mulf %329, %341 : vector<2x32xf32>
    %343 = arith.addf %338, %342 : vector<2x32xf32>
    %344 = math.tanh %343 : vector<2x32xf32>
    %cst_93 = arith.constant 1.000000e+00 : f32
    %345 = vector.broadcast %cst_93 : f32 to vector<2x32xf32>
    %346 = arith.subf %345, %337 : vector<2x32xf32>
    %347 = arith.mulf %346, %344 : vector<2x32xf32>
    %348 = arith.mulf %337, %279 : vector<2x32xf32>
    %349 = arith.addf %347, %348 : vector<2x32xf32>
    %c4_94 = arith.constant 4 : index
    %c0_95 = arith.constant 0 : index
    %c0_96 = arith.constant 0 : index
    %350 = vector.load %arg6[%c4_94, %c0_95, %c0_96] : memref<8x2x64xf32, #tpu.memory_space<vmem>>, vector<1x2x32xf32>
    %351 = vector.shape_cast %350 : vector<1x2x32xf32> to vector<2x32xf32>
    %352 = vector.shape_cast %319 : vector<2x32xf32> to vector<1x2x32xf32>
    tpu.vector_store %arg6[%c4_94, %c0_95, %c0_96], %352 {strides = array<i32>} : memref<8x2x64xf32, #tpu.memory_space<vmem>>, vector<1x2x32xf32>,
    %c3_97 = arith.constant 3 : index
    %c0_98 = arith.constant 0 : index
    %c32_99 = arith.constant 32 : index
    %353 = vector.load %arg6[%c3_97, %c0_98, %c32_99] : memref<8x2x64xf32, #tpu.memory_space<vmem>>, vector<1x2x32xf32>
    %354 = vector.shape_cast %353 : vector<1x2x32xf32> to vector<2x32xf32>
    %355 = vector.shape_cast %349 : vector<2x32xf32> to vector<1x2x32xf32>
    tpu.vector_store %arg6[%c3_97, %c0_98, %c32_99], %355 {strides = array<i32>} : memref<8x2x64xf32, #tpu.memory_space<vmem>>, vector<1x2x32xf32>,
    %c5_100 = arith.constant 5 : index
    %c0_101 = arith.constant 0 : index
    %c0_102 = arith.constant 0 : index
    %356 = vector.load %arg1[%c5_100, %c0_101, %c0_102] : memref<8x2x192xf32, #tpu.memory_space<vmem>>, vector<1x2x192xf32>
    %357 = vector.shape_cast %356 : vector<1x2x192xf32> to vector<2x192xf32>
    %c2_103 = arith.constant 2 : index
    %c0_104 = arith.constant 0 : index
    %c0_105 = arith.constant 0 : index
    %358 = vector.load %arg1[%c2_103, %c0_104, %c0_105] : memref<8x2x192xf32, #tpu.memory_space<vmem>>, vector<1x2x192xf32>
    %359 = vector.shape_cast %358 : vector<1x2x192xf32> to vector<2x192xf32>
    %360 = vector.extract_strided_slice %357 {offsets = [0, 0], sizes = [2, 96], strides = [1, 1]} : vector<2x192xf32> to vector<2x96xf32>
    %cst_106 = arith.constant dense<0.000000e+00> : vector<2x96xf32>
    %361 = tpu.matmul %319, %0, %cst_106 {dimension_numbers = #tpu.dot_dimension_numbers<[1], [0], [0], [1], [0, 0, 1, 1], [], []>} : vector<2x32xf32>, vector<32x96xf32>, vector<2x96xf32> -> vector<2x96xf32>
    %362 = vector.extract_strided_slice %360 {offsets = [0, 0], sizes = [2, 32], strides = [1, 1]} : vector<2x96xf32> to vector<2x32xf32>
    %363 = vector.extract_strided_slice %361 {offsets = [0, 0], sizes = [2, 32], strides = [1, 1]} : vector<2x96xf32> to vector<2x32xf32>
    %364 = arith.addf %362, %363 : vector<2x32xf32>
    %365 = arith.negf %364 : vector<2x32xf32>
    %366 = math.exp %365 : vector<2x32xf32>
    %cst_107 = arith.constant 1.000000e+00 : f32
    %367 = vector.broadcast %cst_107 : f32 to vector<2x32xf32>
    %368 = arith.addf %367, %366 : vector<2x32xf32>
    %369 = arith.divf %367, %368 : vector<2x32xf32>
    %370 = vector.extract_strided_slice %360 {offsets = [0, 32], sizes = [2, 32], strides = [1, 1]} : vector<2x96xf32> to vector<2x32xf32>
    %371 = vector.extract_strided_slice %361 {offsets = [0, 32], sizes = [2, 32], strides = [1, 1]} : vector<2x96xf32> to vector<2x32xf32>
    %372 = arith.addf %370, %371 : vector<2x32xf32>
    %373 = arith.negf %372 : vector<2x32xf32>
    %374 = math.exp %373 : vector<2x32xf32>
    %cst_108 = arith.constant 1.000000e+00 : f32
    %375 = vector.broadcast %cst_108 : f32 to vector<2x32xf32>
    %376 = arith.addf %375, %374 : vector<2x32xf32>
    %377 = arith.divf %375, %376 : vector<2x32xf32>
    %378 = vector.extract_strided_slice %360 {offsets = [0, 64], sizes = [2, 32], strides = [1, 1]} : vector<2x96xf32> to vector<2x32xf32>
    %379 = vector.extract_strided_slice %361 {offsets = [0, 64], sizes = [2, 32], strides = [1, 1]} : vector<2x96xf32> to vector<2x32xf32>
    %380 = vector.broadcast %2 : vector<1x32xf32> to vector<2x32xf32>
    %381 = arith.addf %379, %380 : vector<2x32xf32>
    %382 = arith.mulf %369, %381 : vector<2x32xf32>
    %383 = arith.addf %378, %382 : vector<2x32xf32>
    %384 = math.tanh %383 : vector<2x32xf32>
    %cst_109 = arith.constant 1.000000e+00 : f32
    %385 = vector.broadcast %cst_109 : f32 to vector<2x32xf32>
    %386 = arith.subf %385, %377 : vector<2x32xf32>
    %387 = arith.mulf %386, %384 : vector<2x32xf32>
    %388 = arith.mulf %377, %319 : vector<2x32xf32>
    %389 = arith.addf %387, %388 : vector<2x32xf32>
    %390 = vector.extract_strided_slice %359 {offsets = [0, 96], sizes = [2, 96], strides = [1, 1]} : vector<2x192xf32> to vector<2x96xf32>
    %cst_110 = arith.constant dense<0.000000e+00> : vector<2x96xf32>
    %391 = tpu.matmul %349, %1, %cst_110 {dimension_numbers = #tpu.dot_dimension_numbers<[1], [0], [0], [1], [0, 0, 1, 1], [], []>} : vector<2x32xf32>, vector<32x96xf32>, vector<2x96xf32> -> vector<2x96xf32>
    %392 = vector.extract_strided_slice %390 {offsets = [0, 0], sizes = [2, 32], strides = [1, 1]} : vector<2x96xf32> to vector<2x32xf32>
    %393 = vector.extract_strided_slice %391 {offsets = [0, 0], sizes = [2, 32], strides = [1, 1]} : vector<2x96xf32> to vector<2x32xf32>
    %394 = arith.addf %392, %393 : vector<2x32xf32>
    %395 = arith.negf %394 : vector<2x32xf32>
    %396 = math.exp %395 : vector<2x32xf32>
    %cst_111 = arith.constant 1.000000e+00 : f32
    %397 = vector.broadcast %cst_111 : f32 to vector<2x32xf32>
    %398 = arith.addf %397, %396 : vector<2x32xf32>
    %399 = arith.divf %397, %398 : vector<2x32xf32>
    %400 = vector.extract_strided_slice %390 {offsets = [0, 32], sizes = [2, 32], strides = [1, 1]} : vector<2x96xf32> to vector<2x32xf32>
    %401 = vector.extract_strided_slice %391 {offsets = [0, 32], sizes = [2, 32], strides = [1, 1]} : vector<2x96xf32> to vector<2x32xf32>
    %402 = arith.addf %400, %401 : vector<2x32xf32>
    %403 = arith.negf %402 : vector<2x32xf32>
    %404 = math.exp %403 : vector<2x32xf32>
    %cst_112 = arith.constant 1.000000e+00 : f32
    %405 = vector.broadcast %cst_112 : f32 to vector<2x32xf32>
    %406 = arith.addf %405, %404 : vector<2x32xf32>
    %407 = arith.divf %405, %406 : vector<2x32xf32>
    %408 = vector.extract_strided_slice %390 {offsets = [0, 64], sizes = [2, 32], strides = [1, 1]} : vector<2x96xf32> to vector<2x32xf32>
    %409 = vector.extract_strided_slice %391 {offsets = [0, 64], sizes = [2, 32], strides = [1, 1]} : vector<2x96xf32> to vector<2x32xf32>
    %410 = vector.broadcast %3 : vector<1x32xf32> to vector<2x32xf32>
    %411 = arith.addf %409, %410 : vector<2x32xf32>
    %412 = arith.mulf %399, %411 : vector<2x32xf32>
    %413 = arith.addf %408, %412 : vector<2x32xf32>
    %414 = math.tanh %413 : vector<2x32xf32>
    %cst_113 = arith.constant 1.000000e+00 : f32
    %415 = vector.broadcast %cst_113 : f32 to vector<2x32xf32>
    %416 = arith.subf %415, %407 : vector<2x32xf32>
    %417 = arith.mulf %416, %414 : vector<2x32xf32>
    %418 = arith.mulf %407, %349 : vector<2x32xf32>
    %419 = arith.addf %417, %418 : vector<2x32xf32>
    %c5_114 = arith.constant 5 : index
    %c0_115 = arith.constant 0 : index
    %c0_116 = arith.constant 0 : index
    %420 = vector.load %arg6[%c5_114, %c0_115, %c0_116] : memref<8x2x64xf32, #tpu.memory_space<vmem>>, vector<1x2x32xf32>
    %421 = vector.shape_cast %420 : vector<1x2x32xf32> to vector<2x32xf32>
    %422 = vector.shape_cast %389 : vector<2x32xf32> to vector<1x2x32xf32>
    tpu.vector_store %arg6[%c5_114, %c0_115, %c0_116], %422 {strides = array<i32>} : memref<8x2x64xf32, #tpu.memory_space<vmem>>, vector<1x2x32xf32>,
    %c2_117 = arith.constant 2 : index
    %c0_118 = arith.constant 0 : index
    %c32_119 = arith.constant 32 : index
    %423 = vector.load %arg6[%c2_117, %c0_118, %c32_119] : memref<8x2x64xf32, #tpu.memory_space<vmem>>, vector<1x2x32xf32>
    %424 = vector.shape_cast %423 : vector<1x2x32xf32> to vector<2x32xf32>
    %425 = vector.shape_cast %419 : vector<2x32xf32> to vector<1x2x32xf32>
    tpu.vector_store %arg6[%c2_117, %c0_118, %c32_119], %425 {strides = array<i32>} : memref<8x2x64xf32, #tpu.memory_space<vmem>>, vector<1x2x32xf32>,
    %c6_120 = arith.constant 6 : index
    %c0_121 = arith.constant 0 : index
    %c0_122 = arith.constant 0 : index
    %426 = vector.load %arg1[%c6_120, %c0_121, %c0_122] : memref<8x2x192xf32, #tpu.memory_space<vmem>>, vector<1x2x192xf32>
    %427 = vector.shape_cast %426 : vector<1x2x192xf32> to vector<2x192xf32>
    %c1_123 = arith.constant 1 : index
    %c0_124 = arith.constant 0 : index
    %c0_125 = arith.constant 0 : index
    %428 = vector.load %arg1[%c1_123, %c0_124, %c0_125] : memref<8x2x192xf32, #tpu.memory_space<vmem>>, vector<1x2x192xf32>
    %429 = vector.shape_cast %428 : vector<1x2x192xf32> to vector<2x192xf32>
    %430 = vector.extract_strided_slice %427 {offsets = [0, 0], sizes = [2, 96], strides = [1, 1]} : vector<2x192xf32> to vector<2x96xf32>
    %cst_126 = arith.constant dense<0.000000e+00> : vector<2x96xf32>
    %431 = tpu.matmul %389, %0, %cst_126 {dimension_numbers = #tpu.dot_dimension_numbers<[1], [0], [0], [1], [0, 0, 1, 1], [], []>} : vector<2x32xf32>, vector<32x96xf32>, vector<2x96xf32> -> vector<2x96xf32>
    %432 = vector.extract_strided_slice %430 {offsets = [0, 0], sizes = [2, 32], strides = [1, 1]} : vector<2x96xf32> to vector<2x32xf32>
    %433 = vector.extract_strided_slice %431 {offsets = [0, 0], sizes = [2, 32], strides = [1, 1]} : vector<2x96xf32> to vector<2x32xf32>
    %434 = arith.addf %432, %433 : vector<2x32xf32>
    %435 = arith.negf %434 : vector<2x32xf32>
    %436 = math.exp %435 : vector<2x32xf32>
    %cst_127 = arith.constant 1.000000e+00 : f32
    %437 = vector.broadcast %cst_127 : f32 to vector<2x32xf32>
    %438 = arith.addf %437, %436 : vector<2x32xf32>
    %439 = arith.divf %437, %438 : vector<2x32xf32>
    %440 = vector.extract_strided_slice %430 {offsets = [0, 32], sizes = [2, 32], strides = [1, 1]} : vector<2x96xf32> to vector<2x32xf32>
    %441 = vector.extract_strided_slice %431 {offsets = [0, 32], sizes = [2, 32], strides = [1, 1]} : vector<2x96xf32> to vector<2x32xf32>
    %442 = arith.addf %440, %441 : vector<2x32xf32>
    %443 = arith.negf %442 : vector<2x32xf32>
    %444 = math.exp %443 : vector<2x32xf32>
    %cst_128 = arith.constant 1.000000e+00 : f32
    %445 = vector.broadcast %cst_128 : f32 to vector<2x32xf32>
    %446 = arith.addf %445, %444 : vector<2x32xf32>
    %447 = arith.divf %445, %446 : vector<2x32xf32>
    %448 = vector.extract_strided_slice %430 {offsets = [0, 64], sizes = [2, 32], strides = [1, 1]} : vector<2x96xf32> to vector<2x32xf32>
    %449 = vector.extract_strided_slice %431 {offsets = [0, 64], sizes = [2, 32], strides = [1, 1]} : vector<2x96xf32> to vector<2x32xf32>
    %450 = vector.broadcast %2 : vector<1x32xf32> to vector<2x32xf32>
    %451 = arith.addf %449, %450 : vector<2x32xf32>
    %452 = arith.mulf %439, %451 : vector<2x32xf32>
    %453 = arith.addf %448, %452 : vector<2x32xf32>
    %454 = math.tanh %453 : vector<2x32xf32>
    %cst_129 = arith.constant 1.000000e+00 : f32
    %455 = vector.broadcast %cst_129 : f32 to vector<2x32xf32>
    %456 = arith.subf %455, %447 : vector<2x32xf32>
    %457 = arith.mulf %456, %454 : vector<2x32xf32>
    %458 = arith.mulf %447, %389 : vector<2x32xf32>
    %459 = arith.addf %457, %458 : vector<2x32xf32>
    %460 = vector.extract_strided_slice %429 {offsets = [0, 96], sizes = [2, 96], strides = [1, 1]} : vector<2x192xf32> to vector<2x96xf32>
    %cst_130 = arith.constant dense<0.000000e+00> : vector<2x96xf32>
    %461 = tpu.matmul %419, %1, %cst_130 {dimension_numbers = #tpu.dot_dimension_numbers<[1], [0], [0], [1], [0, 0, 1, 1], [], []>} : vector<2x32xf32>, vector<32x96xf32>, vector<2x96xf32> -> vector<2x96xf32>
    %462 = vector.extract_strided_slice %460 {offsets = [0, 0], sizes = [2, 32], strides = [1, 1]} : vector<2x96xf32> to vector<2x32xf32>
    %463 = vector.extract_strided_slice %461 {offsets = [0, 0], sizes = [2, 32], strides = [1, 1]} : vector<2x96xf32> to vector<2x32xf32>
    %464 = arith.addf %462, %463 : vector<2x32xf32>
    %465 = arith.negf %464 : vector<2x32xf32>
    %466 = math.exp %465 : vector<2x32xf32>
    %cst_131 = arith.constant 1.000000e+00 : f32
    %467 = vector.broadcast %cst_131 : f32 to vector<2x32xf32>
    %468 = arith.addf %467, %466 : vector<2x32xf32>
    %469 = arith.divf %467, %468 : vector<2x32xf32>
    %470 = vector.extract_strided_slice %460 {offsets = [0, 32], sizes = [2, 32], strides = [1, 1]} : vector<2x96xf32> to vector<2x32xf32>
    %471 = vector.extract_strided_slice %461 {offsets = [0, 32], sizes = [2, 32], strides = [1, 1]} : vector<2x96xf32> to vector<2x32xf32>
    %472 = arith.addf %470, %471 : vector<2x32xf32>
    %473 = arith.negf %472 : vector<2x32xf32>
    %474 = math.exp %473 : vector<2x32xf32>
    %cst_132 = arith.constant 1.000000e+00 : f32
    %475 = vector.broadcast %cst_132 : f32 to vector<2x32xf32>
    %476 = arith.addf %475, %474 : vector<2x32xf32>
    %477 = arith.divf %475, %476 : vector<2x32xf32>
    %478 = vector.extract_strided_slice %460 {offsets = [0, 64], sizes = [2, 32], strides = [1, 1]} : vector<2x96xf32> to vector<2x32xf32>
    %479 = vector.extract_strided_slice %461 {offsets = [0, 64], sizes = [2, 32], strides = [1, 1]} : vector<2x96xf32> to vector<2x32xf32>
    %480 = vector.broadcast %3 : vector<1x32xf32> to vector<2x32xf32>
    %481 = arith.addf %479, %480 : vector<2x32xf32>
    %482 = arith.mulf %469, %481 : vector<2x32xf32>
    %483 = arith.addf %478, %482 : vector<2x32xf32>
    %484 = math.tanh %483 : vector<2x32xf32>
    %cst_133 = arith.constant 1.000000e+00 : f32
    %485 = vector.broadcast %cst_133 : f32 to vector<2x32xf32>
    %486 = arith.subf %485, %477 : vector<2x32xf32>
    %487 = arith.mulf %486, %484 : vector<2x32xf32>
    %488 = arith.mulf %477, %419 : vector<2x32xf32>
    %489 = arith.addf %487, %488 : vector<2x32xf32>
    %c6_134 = arith.constant 6 : index
    %c0_135 = arith.constant 0 : index
    %c0_136 = arith.constant 0 : index
    %490 = vector.load %arg6[%c6_134, %c0_135, %c0_136] : memref<8x2x64xf32, #tpu.memory_space<vmem>>, vector<1x2x32xf32>
    %491 = vector.shape_cast %490 : vector<1x2x32xf32> to vector<2x32xf32>
    %492 = vector.shape_cast %459 : vector<2x32xf32> to vector<1x2x32xf32>
    tpu.vector_store %arg6[%c6_134, %c0_135, %c0_136], %492 {strides = array<i32>} : memref<8x2x64xf32, #tpu.memory_space<vmem>>, vector<1x2x32xf32>,
    %c1_137 = arith.constant 1 : index
    %c0_138 = arith.constant 0 : index
    %c32_139 = arith.constant 32 : index
    %493 = vector.load %arg6[%c1_137, %c0_138, %c32_139] : memref<8x2x64xf32, #tpu.memory_space<vmem>>, vector<1x2x32xf32>
    %494 = vector.shape_cast %493 : vector<1x2x32xf32> to vector<2x32xf32>
    %495 = vector.shape_cast %489 : vector<2x32xf32> to vector<1x2x32xf32>
    tpu.vector_store %arg6[%c1_137, %c0_138, %c32_139], %495 {strides = array<i32>} : memref<8x2x64xf32, #tpu.memory_space<vmem>>, vector<1x2x32xf32>,
    %c7_140 = arith.constant 7 : index
    %c0_141 = arith.constant 0 : index
    %c0_142 = arith.constant 0 : index
    %496 = vector.load %arg1[%c7_140, %c0_141, %c0_142] : memref<8x2x192xf32, #tpu.memory_space<vmem>>, vector<1x2x192xf32>
    %497 = vector.shape_cast %496 : vector<1x2x192xf32> to vector<2x192xf32>
    %c0_143 = arith.constant 0 : index
    %c0_144 = arith.constant 0 : index
    %c0_145 = arith.constant 0 : index
    %498 = vector.load %arg1[%c0_143, %c0_144, %c0_145] : memref<8x2x192xf32, #tpu.memory_space<vmem>>, vector<1x2x192xf32>
    %499 = vector.shape_cast %498 : vector<1x2x192xf32> to vector<2x192xf32>
    %500 = vector.extract_strided_slice %497 {offsets = [0, 0], sizes = [2, 96], strides = [1, 1]} : vector<2x192xf32> to vector<2x96xf32>
    %cst_146 = arith.constant dense<0.000000e+00> : vector<2x96xf32>
    %501 = tpu.matmul %459, %0, %cst_146 {dimension_numbers = #tpu.dot_dimension_numbers<[1], [0], [0], [1], [0, 0, 1, 1], [], []>} : vector<2x32xf32>, vector<32x96xf32>, vector<2x96xf32> -> vector<2x96xf32>
    %502 = vector.extract_strided_slice %500 {offsets = [0, 0], sizes = [2, 32], strides = [1, 1]} : vector<2x96xf32> to vector<2x32xf32>
    %503 = vector.extract_strided_slice %501 {offsets = [0, 0], sizes = [2, 32], strides = [1, 1]} : vector<2x96xf32> to vector<2x32xf32>
    %504 = arith.addf %502, %503 : vector<2x32xf32>
    %505 = arith.negf %504 : vector<2x32xf32>
    %506 = math.exp %505 : vector<2x32xf32>
    %cst_147 = arith.constant 1.000000e+00 : f32
    %507 = vector.broadcast %cst_147 : f32 to vector<2x32xf32>
    %508 = arith.addf %507, %506 : vector<2x32xf32>
    %509 = arith.divf %507, %508 : vector<2x32xf32>
    %510 = vector.extract_strided_slice %500 {offsets = [0, 32], sizes = [2, 32], strides = [1, 1]} : vector<2x96xf32> to vector<2x32xf32>
    %511 = vector.extract_strided_slice %501 {offsets = [0, 32], sizes = [2, 32], strides = [1, 1]} : vector<2x96xf32> to vector<2x32xf32>
    %512 = arith.addf %510, %511 : vector<2x32xf32>
    %513 = arith.negf %512 : vector<2x32xf32>
    %514 = math.exp %513 : vector<2x32xf32>
    %cst_148 = arith.constant 1.000000e+00 : f32
    %515 = vector.broadcast %cst_148 : f32 to vector<2x32xf32>
    %516 = arith.addf %515, %514 : vector<2x32xf32>
    %517 = arith.divf %515, %516 : vector<2x32xf32>
    %518 = vector.extract_strided_slice %500 {offsets = [0, 64], sizes = [2, 32], strides = [1, 1]} : vector<2x96xf32> to vector<2x32xf32>
    %519 = vector.extract_strided_slice %501 {offsets = [0, 64], sizes = [2, 32], strides = [1, 1]} : vector<2x96xf32> to vector<2x32xf32>
    %520 = vector.broadcast %2 : vector<1x32xf32> to vector<2x32xf32>
    %521 = arith.addf %519, %520 : vector<2x32xf32>
    %522 = arith.mulf %509, %521 : vector<2x32xf32>
    %523 = arith.addf %518, %522 : vector<2x32xf32>
    %524 = math.tanh %523 : vector<2x32xf32>
    %cst_149 = arith.constant 1.000000e+00 : f32
    %525 = vector.broadcast %cst_149 : f32 to vector<2x32xf32>
    %526 = arith.subf %525, %517 : vector<2x32xf32>
    %527 = arith.mulf %526, %524 : vector<2x32xf32>
    %528 = arith.mulf %517, %459 : vector<2x32xf32>
    %529 = arith.addf %527, %528 : vector<2x32xf32>
    %530 = vector.extract_strided_slice %499 {offsets = [0, 96], sizes = [2, 96], strides = [1, 1]} : vector<2x192xf32> to vector<2x96xf32>
    %cst_150 = arith.constant dense<0.000000e+00> : vector<2x96xf32>
    %531 = tpu.matmul %489, %1, %cst_150 {dimension_numbers = #tpu.dot_dimension_numbers<[1], [0], [0], [1], [0, 0, 1, 1], [], []>} : vector<2x32xf32>, vector<32x96xf32>, vector<2x96xf32> -> vector<2x96xf32>
    %532 = vector.extract_strided_slice %530 {offsets = [0, 0], sizes = [2, 32], strides = [1, 1]} : vector<2x96xf32> to vector<2x32xf32>
    %533 = vector.extract_strided_slice %531 {offsets = [0, 0], sizes = [2, 32], strides = [1, 1]} : vector<2x96xf32> to vector<2x32xf32>
    %534 = arith.addf %532, %533 : vector<2x32xf32>
    %535 = arith.negf %534 : vector<2x32xf32>
    %536 = math.exp %535 : vector<2x32xf32>
    %cst_151 = arith.constant 1.000000e+00 : f32
    %537 = vector.broadcast %cst_151 : f32 to vector<2x32xf32>
    %538 = arith.addf %537, %536 : vector<2x32xf32>
    %539 = arith.divf %537, %538 : vector<2x32xf32>
    %540 = vector.extract_strided_slice %530 {offsets = [0, 32], sizes = [2, 32], strides = [1, 1]} : vector<2x96xf32> to vector<2x32xf32>
    %541 = vector.extract_strided_slice %531 {offsets = [0, 32], sizes = [2, 32], strides = [1, 1]} : vector<2x96xf32> to vector<2x32xf32>
    %542 = arith.addf %540, %541 : vector<2x32xf32>
    %543 = arith.negf %542 : vector<2x32xf32>
    %544 = math.exp %543 : vector<2x32xf32>
    %cst_152 = arith.constant 1.000000e+00 : f32
    %545 = vector.broadcast %cst_152 : f32 to vector<2x32xf32>
    %546 = arith.addf %545, %544 : vector<2x32xf32>
    %547 = arith.divf %545, %546 : vector<2x32xf32>
    %548 = vector.extract_strided_slice %530 {offsets = [0, 64], sizes = [2, 32], strides = [1, 1]} : vector<2x96xf32> to vector<2x32xf32>
    %549 = vector.extract_strided_slice %531 {offsets = [0, 64], sizes = [2, 32], strides = [1, 1]} : vector<2x96xf32> to vector<2x32xf32>
    %550 = vector.broadcast %3 : vector<1x32xf32> to vector<2x32xf32>
    %551 = arith.addf %549, %550 : vector<2x32xf32>
    %552 = arith.mulf %539, %551 : vector<2x32xf32>
    %553 = arith.addf %548, %552 : vector<2x32xf32>
    %554 = math.tanh %553 : vector<2x32xf32>
    %cst_153 = arith.constant 1.000000e+00 : f32
    %555 = vector.broadcast %cst_153 : f32 to vector<2x32xf32>
    %556 = arith.subf %555, %547 : vector<2x32xf32>
    %557 = arith.mulf %556, %554 : vector<2x32xf32>
    %558 = arith.mulf %547, %489 : vector<2x32xf32>
    %559 = arith.addf %557, %558 : vector<2x32xf32>
    %c7_154 = arith.constant 7 : index
    %c0_155 = arith.constant 0 : index
    %c0_156 = arith.constant 0 : index
    %560 = vector.load %arg6[%c7_154, %c0_155, %c0_156] : memref<8x2x64xf32, #tpu.memory_space<vmem>>, vector<1x2x32xf32>
    %561 = vector.shape_cast %560 : vector<1x2x32xf32> to vector<2x32xf32>
    %562 = vector.shape_cast %529 : vector<2x32xf32> to vector<1x2x32xf32>
    tpu.vector_store %arg6[%c7_154, %c0_155, %c0_156], %562 {strides = array<i32>} : memref<8x2x64xf32, #tpu.memory_space<vmem>>, vector<1x2x32xf32>,
    %c0_157 = arith.constant 0 : index
    %c0_158 = arith.constant 0 : index
    %c32_159 = arith.constant 32 : index
    %563 = vector.load %arg6[%c0_157, %c0_158, %c32_159] : memref<8x2x64xf32, #tpu.memory_space<vmem>>, vector<1x2x32xf32>
    %564 = vector.shape_cast %563 : vector<1x2x32xf32> to vector<2x32xf32>
    %565 = vector.shape_cast %559 : vector<2x32xf32> to vector<1x2x32xf32>
    tpu.vector_store %arg6[%c0_157, %c0_158, %c32_159], %565 {strides = array<i32>} : memref<8x2x64xf32, #tpu.memory_space<vmem>>, vector<1x2x32xf32>,
    return
  }
  func.func @transform_0(%arg0: i32) -> (i32, i32, i32) {
    %c0_i32 = arith.constant 0 : i32
    %c0_i32_0 = arith.constant 0 : i32
    %c0_i32_1 = arith.constant 0 : i32
    %c0_i32_2 = arith.constant 0 : i32
    return %c0_i32, %c0_i32_0, %c0_i32_1 : i32, i32, i32
  }
  func.func @transform_1(%arg0: i32) -> (i32, i32) {
    %c0_i32 = arith.constant 0 : i32
    %c0_i32_0 = arith.constant 0 : i32
    %c0_i32_1 = arith.constant 0 : i32
    return %c0_i32, %c0_i32_0 : i32, i32
  }
  func.func @transform_2(%arg0: i32) -> (i32, i32) {
    %c0_i32 = arith.constant 0 : i32
    %c0_i32_0 = arith.constant 0 : i32
    %c0_i32_1 = arith.constant 0 : i32
    return %c0_i32, %c0_i32_0 : i32, i32
  }
  func.func @transform_3(%arg0: i32) -> (i32, i32) {
    %c0_i32 = arith.constant 0 : i32
    %c0_i32_0 = arith.constant 0 : i32
    %c0_i32_1 = arith.constant 0 : i32
    return %c0_i32, %c0_i32_0 : i32, i32
  }
  func.func @transform_4(%arg0: i32) -> (i32, i32) {
    %c0_i32 = arith.constant 0 : i32
    %c0_i32_0 = arith.constant 0 : i32
    %c0_i32_1 = arith.constant 0 : i32
    return %c0_i32, %c0_i32_0 : i32, i32
  }
  func.func @transform_5(%arg0: i32) -> (i32, i32, i32) {
    %c0_i32 = arith.constant 0 : i32
    %c0_i32_0 = arith.constant 0 : i32
    %c0_i32_1 = arith.constant 0 : i32
    %c0_i32_2 = arith.constant 0 : i32
    return %c0_i32, %c0_i32_0, %c0_i32_1 : i32, i32, i32
  }
}

module attributes {stable_mosaic.version = 11 : i64} {
  func.func @_dense_sigmoid_kernel(%arg0: i32, %arg1: memref<16x64xf32, #tpu.memory_space<vmem>>, %arg2: memref<64x128xf32, #tpu.memory_space<vmem>>, %arg3: memref<1x128xf32, #tpu.memory_space<vmem>>, %arg4: memref<16x128xf32, #tpu.memory_space<vmem>>) attributes {dimension_semantics = [#tpu.dimension_semantics<parallel>], iteration_bounds = array<i64: 1>, scalar_prefetch = 0 : i64, scratch_operands = 0 : i64, tpu.core_type = #tpu.core_type<tc>, window_params = [{transform_indices = @transform_0, window_bounds = array<i64: 16, 64>}, {pipeline_mode = #tpu.pipeline_mode<synchronous>, transform_indices = @transform_1, window_bounds = array<i64: 64, 128>}, {pipeline_mode = #tpu.pipeline_mode<synchronous>, transform_indices = @transform_2, window_bounds = array<i64: 1, 128>}, {transform_indices = @transform_3, window_bounds = array<i64: 16, 128>}]} {
    %c0 = arith.constant 0 : index
    %c0_0 = arith.constant 0 : index
    %0 = vector.load %arg1[%c0, %c0_0] : memref<16x64xf32, #tpu.memory_space<vmem>>, vector<16x64xf32>
    %c0_1 = arith.constant 0 : index
    %c0_2 = arith.constant 0 : index
    %1 = vector.load %arg2[%c0_1, %c0_2] : memref<64x128xf32, #tpu.memory_space<vmem>>, vector<64x128xf32>
    %cst = arith.constant dense<0.000000e+00> : vector<16x128xf32>
    %2 = tpu.matmul %0, %1, %cst {dimension_numbers = #tpu.dot_dimension_numbers<[1], [0], [0], [1], [0, 0, 1, 1], [], []>} : vector<16x64xf32>, vector<64x128xf32>, vector<16x128xf32> -> vector<16x128xf32>
    %c0_3 = arith.constant 0 : index
    %c0_4 = arith.constant 0 : index
    %3 = vector.load %arg3[%c0_3, %c0_4] : memref<1x128xf32, #tpu.memory_space<vmem>>, vector<1x128xf32>
    %4 = vector.broadcast %3 : vector<1x128xf32> to vector<16x128xf32>
    %5 = arith.addf %2, %4 : vector<16x128xf32>
    %6 = arith.negf %5 : vector<16x128xf32>
    %7 = math.exp %6 : vector<16x128xf32>
    %cst_5 = arith.constant 1.000000e+00 : f32
    %8 = vector.broadcast %cst_5 : f32 to vector<16x128xf32>
    %9 = arith.addf %8, %7 : vector<16x128xf32>
    %10 = arith.divf %8, %9 : vector<16x128xf32>
    %c0_6 = arith.constant 0 : index
    %c0_7 = arith.constant 0 : index
    %11 = vector.load %arg4[%c0_6, %c0_7] : memref<16x128xf32, #tpu.memory_space<vmem>>, vector<16x128xf32>
    tpu.vector_store %arg4[%c0_6, %c0_7], %10 {strides = array<i32>} : memref<16x128xf32, #tpu.memory_space<vmem>>, vector<16x128xf32>,
    return
  }
  func.func @transform_0(%arg0: i32) -> (i32, i32) {
    %c0_i32 = arith.constant 0 : i32
    %c0_i32_0 = arith.constant 0 : i32
    return %arg0, %c0_i32 : i32, i32
  }
  func.func @transform_1(%arg0: i32) -> (i32, i32) {
    %c0_i32 = arith.constant 0 : i32
    %c0_i32_0 = arith.constant 0 : i32
    %c0_i32_1 = arith.constant 0 : i32
    return %c0_i32, %c0_i32_0 : i32, i32
  }
  func.func @transform_2(%arg0: i32) -> (i32, i32) {
    %c0_i32 = arith.constant 0 : i32
    %c0_i32_0 = arith.constant 0 : i32
    %c0_i32_1 = arith.constant 0 : i32
    return %c0_i32, %c0_i32_0 : i32, i32
  }
  func.func @transform_3(%arg0: i32) -> (i32, i32) {
    %c0_i32 = arith.constant 0 : i32
    %c0_i32_0 = arith.constant 0 : i32
    return %arg0, %c0_i32 : i32, i32
  }
}

</mosaic_0001>

<bundles_post_ra>
// kernel: transduction_rnn_forward.7
= control target key start
LH: loop header
LB: loop body
LE: loop exit
PB: predicated region body
PF: predicated region fallthrough
CT: control target
= control target key end

     0   :  { %v155_v3 = vmov 0.0   ;;  %vm44_vm0 = vcmask 523264   ;;  %v34_v19 = vlaneseq  ;;  %s249_s1 = inlined_call_operand.vmem [shape: f32[64,192], index: 1, kind: input, shape index: {}]   ;;  %s250_s0 = inlined_call_operand.vmem [shape: f32[16,64], index: 0, kind: input, shape index: {}]   ;;  %s251_s2 = inlined_call_operand.vmem [shape: f32[1,192], index: 2, kind: input, shape index: {}]   ;;  %s252_s3 = inlined_call_operand.vmem [shape: f32[16,192], index: 3, kind: output, shape index: {}]  }
   0x1   :  { %v31_v0 = vld [vmem:[%s249_s1 + $0x78] sm:$0xff]  ;;  %v30_v1 = vld [vmem:[%s249_s1 + $0x70] sm:$0xff]  ;;  %v29_v2 = vld [vmem:[%s249_s1 + $0x68] sm:$0xff]  ;;  %115 = vmatprep.mubr.f32.mxu0 %v155_v3  ;;  %121 = vmatprep.mubr.f32.mxu1 %v155_v3 }
   0x2   :  { %67 = vmatprep.subr.mxu0 %v31_v0  ;;  %138 = vmatprep.subr.mxu1 %v31_v0  ;;  %v28_v4 = vld [vmem:[%s249_s1 + $0x60] sm:$0xff]  ;;  %v27_v5 = vld [vmem:[%s249_s1 + $0x58] sm:$0xff]  ;;  %v26_v6 = vld [vmem:[%s249_s1 + $0x50] sm:$0xff]  ;;  %v35_v20 = vshrl.u32 %v34_v19, 7 }
   0x3   :  { %68 = vmatpush1.msra.mxu0 %v30_v1  ;;  %146 = vmatpush1.msra.mxu1 %v30_v1  ;;  %v25_v7 = vld [vmem:[%s249_s1 + $0x48] sm:$0xff]  ;;  %v24_v8 = vld [vmem:[%s249_s1 + $0x40] sm:$0xff]  ;;  %v23_v9 = vld [vmem:[%s249_s1 + $0x38] sm:$0xff] }
   0x4   :  { %69 = vmatprep.subr.mxu0 %v29_v2  ;;  %139 = vmatprep.subr.mxu1 %v29_v2  ;;  %v22_v10 = vld [vmem:[%s249_s1 + $0x30] sm:$0xff]  ;;  %v21_v11 = vld [vmem:[%s249_s1 + $0x28] sm:$0xff]  ;;  %v20_v12 = vld [vmem:[%s249_s1 + $0x20] sm:$0xff]  ;;  %v36_v21 = vsub.s32 0, %v35_v20  ;;  %v40_v23 = vsub.s32 1, %v35_v20 }
   0x5   :  { %70 = vmatpush1.msra.mxu0 %v28_v4  ;;  %147 = vmatpush1.msra.mxu1 %v28_v4  ;;  %v19_v13 = vld [vmem:[%s249_s1 + $0x18] sm:$0xff]  ;;  %v18_v14 = vld [vmem:[%s249_s1 + $0x10] sm:$0xff]  ;;  %v17_v15 = vld [vmem:[%s249_s1 + $0x8] sm:$0xff] }
   0x6   :  { %71 = vmatprep.subr.mxu0 %v27_v5  ;;  %140 = vmatprep.subr.mxu1 %v27_v5  ;;  %v16_v16 = vld [vmem:[%s249_s1] sm:$0xff]  ;;  %v15_v18 = vld [vmem:[%s250_s0 + $0x8] sm:$0xff] }
   0x7   :  { %72 = vmatpush1.msra.mxu0 %v26_v6  ;;  %148 = vmatpush1.msra.mxu1 %v26_v6  ;;  %v14_v17 = vld [vmem:[%s250_s0] sm:$0xff] }
   0x8   :  { %73 = vmatprep.subr.mxu0 %v25_v7  ;;  %141 = vmatprep.subr.mxu1 %v25_v7  ;;  %v32_v22 = vld [vmem:[%s251_s2] sm:$0x3] }
   0x9   :  { %74 = vmatpush1.msra.mxu0 %v24_v8  ;;  %149 = vmatpush1.msra.mxu1 %v24_v8  ;;  %v37_v24 = vrot.slane %v32_v22, %v36_v21  ;;  %v41_v25 = vrot.slane %v32_v22, %v40_v23 }
   0xa   :  { %75 = vmatprep.subr.mxu0 %v23_v9  ;;  %142 = vmatprep.subr.mxu1 %v23_v9 }
   0xb   :  { %76 = vmatpush1.msra.mxu0 %v22_v10  ;;  %150 = vmatpush1.msra.mxu1 %v22_v10 }
   0xc   :  { %77 = vmatprep.subr.mxu0 %v21_v11  ;;  %143 = vmatprep.subr.mxu1 %v21_v11 }
   0xd   :  { %78 = vmatpush1.msra.mxu0 %v20_v12  ;;  %151 = vmatpush1.msra.mxu1 %v20_v12 }
   0xe   :  { %79 = vmatprep.subr.mxu0 %v19_v13  ;;  %144 = vmatprep.subr.mxu1 %v19_v13 }
   0xf   :  { %80 = vmatpush1.msra.mxu0 %v18_v14  ;;  %152 = vmatpush1.msra.mxu1 %v18_v14 }
  0x10   :  { %81 = vmatprep.subr.mxu0 %v17_v15  ;;  %145 = vmatprep.subr.mxu1 %v17_v15 }
  0x11   :  { %82 = vmatpush1.msra.mxu0 %v16_v16  ;;  %153 = vmatpush1.msra.mxu1 %v16_v16 }
  0x12   :  { %136 = vmatmul.mubr.msk.f32.vlgmr.msra.gmra.mxu0 %vm44_vm0, %v14_v17  ;;  %137 = vmatmul.mubr.msk.f32.vlgmr.msra.gmra.mxu1 %vm44_vm0, %v15_v18 }
  0xd2   :  { %v117_v26 = vpop.f32.mrf.mxu0  ;;  %v123_v27 = vpop.f32.mrf.mxu1 }
  0xd3   :  { %v118_v28 = vadd.f32 %v117_v26, %v37_v24  ;;  %v124_v29 = vadd.f32 %v123_v27, %v37_v24 }
  0xd4   :  { %v119_v30 = vpop.f32.mrf.mxu0  ;;  %v125_v31 = vpop.f32.mrf.mxu1 }
  0xd5   :  { %128 = vst [vmem:[%s252_s3] sm:$0xff] %v118_v28  ;;  %130 = vst [vmem:[%s252_s3 + $0x10] sm:$0xff] %v124_v29  ;;  %v120_v32 = vadd.f32 %v119_v30, %v41_v25  ;;  %v126_v33 = vadd.f32 %v125_v31, %v41_v25 }
  0xd7   :  { %129 = vst.msk [vmem:[%s252_s3 + $0x8] sm:$0xff] %vm44_vm0, %v120_v32  ;;  %131 = vst.msk [vmem:[%s252_s3 + $0x18] sm:$0xff] %vm44_vm0, %v126_v33 }

// kernel: transduction_rnn_forward.5
= control target key start
LH: loop header
LB: loop body
LE: loop exit
PB: predicated region body
PF: predicated region fallthrough
CT: control target
= control target key end

     0   :  { %vm41_vm0 = vcmask 1040384   ;;  %v145_v3 = vmov 0.0   ;;  %vm34_vm1 = vcmask 138240   ;;  %v24_v9 = vlaneseq  ;;  %s205_s1 = inlined_call_operand.vmem [shape: f32[17,192], index: 1, kind: input, shape index: {}]   ;;  %s206_s0 = inlined_call_operand.vmem [shape: f32[16,17], index: 0, kind: input, shape index: {}]   ;;  %s207_s2 = inlined_call_operand.vmem [shape: f32[1,192], index: 2, kind: input, shape index: {}]   ;;  %s208_s3 = inlined_call_operand.vmem [shape: f32[16,192], index: 3, kind: output, shape index: {}]  }
   0x1   :  { %v21_v0 = vld [vmem:[%s205_s1 + $0x28] sm:$0x1]  ;;  %v20_v1 = vld [vmem:[%s205_s1 + $0x20] sm:$0x1]  ;;  %v19_v2 = vld [vmem:[%s205_s1 + $0x18] sm:$0xff]  ;;  %112 = vmatprep.mubr.f32.mxu0 %v145_v3  ;;  %118 = vmatprep.mubr.f32.mxu1 %v145_v3  ;;  %vm126_vm2 = vcmask 523264  }
   0x2   :  { %134 = vmatprep.subr.msk.mxu0 %vm41_vm0, %v21_v0  ;;  %138 = vmatprep.subr.msk.mxu1 %vm41_vm0, %v21_v0  ;;  %v18_v4 = vld [vmem:[%s205_s1 + $0x10] sm:$0xff]  ;;  %v17_v5 = vld [vmem:[%s205_s1 + $0x8] sm:$0xff]  ;;  %v16_v6 = vld [vmem:[%s205_s1] sm:$0xff]  ;;  %v25_v10 = vshrl.u32 %v24_v9, 7 }
   0x3   :  { %135 = vmatpush1.msk.msra.mxu0 %vm41_vm0, %v20_v1  ;;  %141 = vmatpush1.msk.msra.mxu1 %vm41_vm0, %v20_v1  ;;  %v14_v7 = vld [vmem:[%s206_s0] sm:$0xff]  ;;  %v15_v8 = vld [vmem:[%s206_s0 + $0x8] sm:$0xff] }
   0x4   :  { %76 = vmatprep.subr.mxu0 %v19_v2  ;;  %139 = vmatprep.subr.mxu1 %v19_v2  ;;  %v26_v11 = vsub.s32 0, %v25_v10  ;;  %v22_v12 = vld [vmem:[%s207_s2] sm:$0x3]  ;;  %v30_v13 = vsub.s32 1, %v25_v10 }
   0x5   :  { %77 = vmatpush1.msra.mxu0 %v18_v4  ;;  %142 = vmatpush1.msra.mxu1 %v18_v4 }
   0x6   :  { %78 = vmatprep.subr.mxu0 %v17_v5  ;;  %140 = vmatprep.subr.mxu1 %v17_v5  ;;  %v27_v14 = vrot.slane %v22_v12, %v26_v11  ;;  %v31_v15 = vrot.slane %v22_v12, %v30_v13 }
   0x7   :  { %79 = vmatpush1.msra.mxu0 %v16_v6  ;;  %143 = vmatpush1.msra.mxu1 %v16_v6 }
   0x8   :  { %136 = vmatmul.mubr.msk.f32.vlgmr.msra.gmra.mxu0 %vm34_vm1, %v14_v7  ;;  %137 = vmatmul.mubr.msk.f32.vlgmr.msra.gmra.mxu1 %vm34_vm1, %v15_v8 }
  0xc8   :  { %v114_v16 = vpop.f32.mrf.mxu0  ;;  %v120_v17 = vpop.f32.mrf.mxu1 }
  0xc9   :  { %v115_v18 = vadd.f32 %v114_v16, %v27_v14  ;;  %v121_v19 = vadd.f32 %v120_v17, %v27_v14 }
  0xca   :  { %v116_v20 = vpop.f32.mrf.mxu0  ;;  %v122_v21 = vpop.f32.mrf.mxu1 }
  0xcb   :  { %125 = vst [vmem:[%s208_s3] sm:$0xff] %v115_v18  ;;  %128 = vst [vmem:[%s208_s3 + $0x10] sm:$0xff] %v121_v19  ;;  %v117_v22 = vadd.f32 %v116_v20, %v31_v15  ;;  %v123_v23 = vadd.f32 %v122_v21, %v31_v15 }
  0xcd   :  { %127 = vst.msk [vmem:[%s208_s3 + $0x8] sm:$0xff] %vm126_vm2, %v117_v22  ;;  %129 = vst.msk [vmem:[%s208_s3 + $0x18] sm:$0xff] %vm126_vm2, %v123_v23 }

// kernel: transduction_rnn_forward.9
= control target key start
LH: loop header
LB: loop body
LE: loop exit
PB: predicated region body
PF: predicated region fallthrough
CT: control target
= control target key end

     0   :  { %vm31_vm0 = vcmask 523264   ;;  %s234_s1 = inlined_call_operand.vmem [shape: f32[64,128], index: 1, kind: input, shape index: {}]   ;;  %s235_s0 = inlined_call_operand.vmem [shape: f32[16,64], index: 0, kind: input, shape index: {}]   ;;  %s236_s2 = inlined_call_operand.vmem [shape: f32[1,128], index: 2, kind: input, shape index: {}]   ;;  %s237_s3 = inlined_call_operand.vmem [shape: f32[16,128], index: 3, kind: output, shape index: {}]  }
   0x1   :  { %v23_v0 = vld [vmem:[%s234_s1 + $0x38] sm:$0xff]  ;;  %v22_v1 = vld [vmem:[%s234_s1 + $0x30] sm:$0xff]  ;;  %v21_v2 = vld [vmem:[%s234_s1 + $0x28] sm:$0xff] }
   0x2   :  { %146 = vmatprep.subr.mxu0 %v23_v0  ;;  %v14_v3 = vld [vmem:[%s235_s0] sm:$0xff]  ;;  %v19_v5 = vld [vmem:[%s234_s1 + $0x18] sm:$0xff]  ;;  %v18_v6 = vld [vmem:[%s234_s1 + $0x10] sm:$0xff] }
   0x3   :  { %147 = vmatpush3.msra.mxu0 %v23_v0  ;;  %162 = vmatprep.mubr.msk.f32.mxu0 %vm31_vm0, %v14_v3  ;;  %v20_v4 = vld [vmem:[%s234_s1 + $0x20] sm:$0xff]  ;;  %v17_v7 = vld [vmem:[%s234_s1 + $0x8] sm:$0xff] }
   0x4   :  { %148 = vmatprep.subr.mxu0 %v22_v1  ;;  %v16_v8 = vld [vmem:[%s234_s1] sm:$0xff]  ;;  %v15_v9 = vld [vmem:[%s235_s0 + $0x8] sm:$0xff] }
   0x5   :  { %149 = vmatpush3.msra.mxu0 %v22_v1  ;;  %v131_v10 = vld [vmem:[%s236_s2] ss:$0 sm:$0xff] }
   0x6   :  { %150 = vmatprep.subr.mxu0 %v21_v2 }
   0x7   :  { %151 = vmatpush3.msra.mxu0 %v21_v2 }
   0x8   :  { %152 = vmatprep.subr.mxu0 %v20_v4 }
   0x9   :  { %153 = vmatpush3.msra.mxu0 %v20_v4 }
   0xa   :  { %154 = vmatprep.subr.mxu0 %v19_v5 }
   0xb   :  { %155 = vmatpush3.msra.mxu0 %v19_v5 }
   0xc   :  { %156 = vmatprep.subr.mxu0 %v18_v6 }
   0xd   :  { %157 = vmatpush3.msra.mxu0 %v18_v6 }
   0xe   :  { %158 = vmatprep.subr.mxu0 %v17_v7 }
   0xf   :  { %159 = vmatpush3.msra.mxu0 %v17_v7 }
  0x10   :  { %160 = vmatprep.subr.mxu0 %v16_v8 }
  0x11   :  { %161 = vmatpush3.msra.mxu0 %v16_v8 }
  0x12   :  { %163 = vmatmul.mubr.msk.f32.vlgmr.msra.gmra.mxu0 %vm31_vm0, %v15_v9 }
  0xd2   :  { %v164_v11 = vpop.f32.mrf.mxu0 }
  0xd3   :  { %v110_v12 = vadd.f32 %v164_v11, %v131_v10 }
  0xd4   :  { %v104_v13 = vpop.f32.mrf.mxu0 }
  0xd5   :  { %v135_v14 = vmul.f32 -1.442695, %v110_v12  ;;  %v105_v15 = vadd.f32 %v131_v10, %v104_v13 }
  0xd7   :  { %165 = vpow2.f32 %v135_v14  ;;  %v134_v16 = vmul.f32 -1.442695, %v105_v15 }
  0xd9   :  { %167 = vpow2.f32 %v134_v16 }
  0xe4   :  { %v166_v17 = vpop.eup %165 }
  0xe5   :  { %v120_v18 = vadd.f32 1.0, %v166_v17 }
  0xe6   :  { %v168_v19 = vpop.eup %167 }
  0xe7   :  { %169 = vrcp.f32 %v120_v18  ;;  %v119_v20 = vadd.f32 1.0, %v168_v19 }
  0xe9   :  { %171 = vrcp.f32 %v119_v20 }
  0xf4   :  { %v170_v21 = vpop.eup %169 }
  0xf5   :  { %126 = vst [vmem:[%s237_s3 + $0x8] sm:$0xff] %v170_v21 }
  0xf6   :  { %v172_v22 = vpop.eup %171 }
  0xf7   :  { %125 = vst [vmem:[%s237_s3] sm:$0xff] %v172_v22 }

// kernel: transduction_rnn_forward.6
= control target key start
LH: loop header
LB: loop body
LE: loop exit
PB: predicated region body
PF: predicated region fallthrough
CT: control target
= control target key end

     0   :  { %v2600_v0 = vmov 0.0   ;;  %vm2601_vm0 = vmmov 0   ;;  %s2602_s26 = smov 64   ;;  %v2603_v6 = vmov 1983009808   ;;  %v127_v8 = vlaneseq  ;;  %s2604_s30 = smov 96   ;;  %s3194_s1 = inlined_call_operand.vmem [shape: f32[32,96], index: 1, kind: input, shape index: {}]   ;;  %s3195_s3 = inlined_call_operand.vmem [shape: f32[1,32], index: 3, kind: input, shape index: {}]   ;;  %s3196_s0 = inlined_call_operand.vmem [shape: f32[8,2,192], index: 0, kind: input, shape index: {}]   ;;  %s3197_s5 = inlined_call_operand.vmem [shape: f32[8,2,64], index: 5, kind: output, shape index: {}]   ;;  %s3198_s2 = inlined_call_operand.vmem [shape: f32[32,96], index: 2, kind: input, shape index: {}]   ;;  %s3199_s4 = inlined_call_operand.vmem [shape: f32[1,32], index: 4, kind: input, shape index: {}]  }
   0x1   :  { %2286 = vmatprep.subr.mxu0 %v2600_v0  ;;  %v2640_v1 = vld [vmem:[%s3194_s1 + $0x18] sm:$0xff]  ;;  %v2645_v2 = vld [vmem:[%s3194_s1 + $0x10] sm:$0xff]  ;;  %2294 = vmatprep.mubr.msk.f32.mxu0 %vm2601_vm0, %v2600_v0  ;;  %v2140_v3 = vld [vmem:[%s3195_s3] ss:$0 sm:$0xff]  ;;  %v125_v7 = vunpack.c.l.s4 %v2603_v6  ;;  %vm293_vm1 = vcmask 254976   ;;  %vm33_vm2 = vcmask 261120  }
   0x2   :  { %2287 = vmatpush3.msra.mxu0 %v2640_v1  ;;  %2297 = vmatprep.subr.mxu1 %v2600_v0  ;;  %v2658_v4 = vld [vmem:[%s3194_s1 + $0x8] sm:$0xff]  ;;  %v2668_v5 = vld [vmem:[%s3194_s1] sm:$0xff]  ;;  %v128_v10 = vshrl.u32 %v127_v8, 7  ;;  %v2720_v35 = vld [vmem:[%s3198_s2 + $0x18] sm:$0xff]  ;;  %vm307_vm3 = vcmask 517376  }
   0x3   :  { %2288 = vmatprep.subr.mxu0 %v2600_v0  ;;  %119 = vrot.lane.b32.xlu0 %v2140_v3, %s2602_s26  ;;  %v126_v9 = vunpack.c.0.s8 %v125_v7  ;;  %v30_v17 = vld [vmem:[%s3196_s0] sm:$0xf]  ;;  %v2725_v36 = vld [vmem:[%s3198_s2 + $0x10] sm:$0xff]  ;;  %v2732_v37 = vld [vmem:[%s3198_s2 + $0x8] sm:$0xff] }
   0x4   :  { %2289 = vmatpush3.msra.mxu0 %v2645_v2  ;;  %2305 = vmatprep.mubr.msk.f32.mxu1 %vm2601_vm0, %v2600_v0  ;;  %v2739_v38 = vld [vmem:[%s3198_s2] sm:$0xff]  ;;  %v2138_v6 = vld [vmem:[%s3196_s0 + $0x1c] sm:$0xf] }
   0x5   :  { %2290 = vmatprep.subr.mxu0 %v2600_v0  ;;  %v2687_v12 = vsub.s32 %v126_v9, %v128_v10  ;;  %2298 = vmatpush3.msra.mxu1 %v2720_v35  ;;  %v2145_v43 = vld [vmem:[%s3196_s0 + $0x4] sm:$0xf]  ;;  %v2143_v51 = vld [vmem:[%s3199_s4] ss:$0 sm:$0xff]  ;;  %s2605_s4 = smov 32  }
   0x6   :  { %2291 = vmatpush3.msra.mxu0 %v2658_v4  ;;  %2299 = vmatprep.subr.mxu1 %v2600_v0 }
   0x7   :  { %2292 = vmatprep.subr.mxu0 %v2600_v0  ;;  %2300 = vmatpush3.msra.mxu1 %v2725_v36 }
   0x8   :  { %2293 = vmatpush3.msra.mxu0 %v2668_v5  ;;  %2301 = vmatprep.subr.mxu1 %v2600_v0 }
   0x9   :  { %2295 = vmatmul.mubr.f32.vlgmr.msra.gmra.mxu0 %v2600_v0  ;;  %2308 = vmatprep.subr.mxu0 %v2600_v0 }
   0xa   :  { %2309 = vmatpush3.msra.mxu0 %v2640_v1  ;;  %2316 = vmatprep.mubr.msk.f32.mxu0 %vm2601_vm0, %v2600_v0 }
   0xb   :  { %2310 = vmatprep.subr.mxu0 %v2600_v0  ;;  %2302 = vmatpush3.msra.mxu1 %v2732_v37 }
   0xc   :  { %2311 = vmatpush3.msra.mxu0 %v2645_v2  ;;  %2303 = vmatprep.subr.mxu1 %v2600_v0 }
   0xd   :  { %2312 = vmatprep.subr.mxu0 %v2600_v0  ;;  %2304 = vmatpush3.msra.mxu1 %v2739_v38 }
   0xe   :  { %2313 = vmatpush3.msra.mxu0 %v2658_v4  ;;  %2306 = vmatmul.mubr.f32.vlgmr.msra.gmra.mxu1 %v2600_v0 }
   0xf   :  { %2314 = vmatprep.subr.mxu0 %v2600_v0  ;;  %2319 = vmatprep.subr.mxu1 %v2600_v0 }
  0x10   :  { %2315 = vmatpush3.msra.mxu0 %v2668_v5  ;;  %2320 = vmatpush3.msra.mxu1 %v2720_v35 }
  0x11   :  { %2330 = vmatprep.subr.mxu0 %v2600_v0  ;;  %2327 = vmatprep.mubr.msk.f32.mxu1 %vm2601_vm0, %v2600_v0 }
  0x12   :  { %2321 = vmatprep.subr.mxu1 %v2600_v0 }
  0x13   :  { %2322 = vmatpush3.msra.mxu1 %v2725_v36 }
  0x14   :  { %2323 = vmatprep.subr.mxu1 %v2600_v0 }
  0x15   :  { %2324 = vmatpush3.msra.mxu1 %v2732_v37 }
  0x16   :  { %2325 = vmatprep.subr.mxu1 %v2600_v0 }
  0x17   :  { %2326 = vmatpush3.msra.mxu1 %v2739_v38 }
  0x18   :  { %2341 = vmatprep.subr.mxu1 %v2600_v0 }
  0x75   :  { %v2685_v11 = vpop.permute.xlu0 %119 }
  0xc9   :  { %v103_v13 = vpop.f32.mrf.mxu0 }
  0xca   :  { %v122_v14 = vadd.f32 %v2685_v11, %v103_v13  ;;  %v107_v18 = vadd.f32 %v103_v13, %v30_v17 }
  0xcb   :  { %v2296_v15 = vpop.f32.mrf.mxu0 }
  0xcc   :  { %v130_v16 = vrot.slane %v122_v14, %v2687_v12  ;;  %v2139_v19 = vmul.f32 -1.442695, %v107_v18 }
  0xce   :  { %131 = vrot.lane.b32.xlu0 %v130_v16, %s2602_s26  ;;  %2468 = vpow2.f32 %v2139_v19  ;;  %v215_v52 = vpop.f32.mrf.mxu1  ;;  %v238_v19 = vrot.slane %v2138_v6, 2 }
  0xcf   :  { %v226_v58 = vrot.slane %v215_v52, %v2687_v12 }
  0xd0   :  { %v2307_v53 = vpop.f32.mrf.mxu1 }
  0xdb   :  { %v2469_v20 = vpop.eup %2468 }
  0xdc   :  { %v111_v21 = vadd.f32 1.0, %v2469_v20 }
  0xde   :  { %2470 = vrcp.f32 %v111_v21 }
  0xeb   :  { %v2471_v22 = vpop.eup %2470 }
  0xec   :  { %v141_v28 = vsub.f32 1.0, %v2471_v22  ;;  %v147_v30 = vmul.f32 0.0, %v2471_v22 }
 0x140   :  { %v132_v23 = vpop.permute.xlu0 %131 }
 0x141   :  { %v134_v24 = vmul.f32 %v2471_v22, %v132_v23 }
 0x143   :  { %136 = vrot.lane.b32.xlu1 %v134_v24, %s2602_s26 }
 0x1b5   :  { %v137_v25 = vpop.permute.xlu1 %136 }
 0x1b6   :  { %v139_v26 = vadd.f32 %v137_v25, %v30_v17 }
 0x1b8   :  { %2472 = vtanh.f32 %v139_v26 }
 0x1c5   :  { %v2473_v27 = vpop.eup %2472 }
 0x1c6   :  { %143 = vrot.lane.b32.xlu1 %v2473_v27, %s2604_s30 }
 0x238   :  { %v144_v29 = vpop.permute.xlu1 %143 }
 0x239   :  { %v146_v31 = vmul.f32 %v144_v29, %v141_v28 }
 0x23b   :  { %v2697_v32 = vadd.f32 %v147_v30, %v146_v31 }
 0x23d   :  { %v289_v33 = vrot.slane %v2697_v32, %v2687_v12 }
 0x23f   :  { %290 = vrot.lane.b32.xlu0 %v289_v33, %s2604_s30 }
 0x2b1   :  { %v291_v34 = vpop.permute.xlu0 %290 }
 0x2b2   :  { %294 = vst.msk [vmem:[%s3197_s5] sm:$0x3] %vm293_vm1, %v291_v34  ;;  %2317 = vmatmul.mubr.msk.f32.vlgmr.msra.gmra.mxu0 %vm33_vm2, %v291_v34 }
 0x2b3   :  { %2331 = vmatpush3.msra.mxu0 %v2640_v1  ;;  %2338 = vmatprep.mubr.msk.f32.mxu0 %vm2601_vm0, %v2600_v0 }
 0x2b4   :  { %2332 = vmatprep.subr.mxu0 %v2600_v0 }
 0x2b5   :  { %2333 = vmatpush3.msra.mxu0 %v2645_v2 }
 0x2b6   :  { %2334 = vmatprep.subr.mxu0 %v2600_v0 }
 0x2b7   :  { %2335 = vmatpush3.msra.mxu0 %v2658_v4 }
 0x2b8   :  { %2336 = vmatprep.subr.mxu0 %v2600_v0 }
 0x2b9   :  { %2337 = vmatpush3.msra.mxu0 %v2668_v5 }
 0x2ba   :  { %2352 = vmatprep.subr.mxu0 %v2600_v0 }
 0x372   :  { %v381_v39 = vpop.f32.mrf.mxu0 }
 0x373   :  { %v392_v40 = vadd.f32 %v381_v39, %v2685_v11  ;;  %v385_v44 = vadd.f32 %v2145_v43, %v381_v39 }
 0x374   :  { %v2318_v41 = vpop.f32.mrf.mxu0 }
 0x375   :  { %v400_v42 = vrot.slane %v392_v40, %v2687_v12  ;;  %v2148_v45 = vmul.f32 -1.442695, %v385_v44 }
 0x377   :  { %401 = vrot.lane.b32.xlu1 %v400_v42, %s2602_s26  ;;  %2474 = vpow2.f32 %v2148_v45 }
 0x384   :  { %v2475_v46 = vpop.eup %2474 }
 0x385   :  { %v389_v47 = vadd.f32 1.0, %v2475_v46  ;;  %v2154_v46 = vld [vmem:[%s3196_s0 + $0x8] sm:$0xf] }
 0x387   :  { %2476 = vrcp.f32 %v389_v47 }
 0x394   :  { %v2477_v48 = vpop.eup %2476 }
 0x395   :  { %v411_v61 = vsub.f32 1.0, %v2477_v48  ;;  %v417_v63 = vmul.f32 %v2477_v48, %v2697_v32 }
 0x3e9   :  { %v402_v49 = vpop.permute.xlu1 %401 }
 0x3ea   :  { %v404_v50 = vmul.f32 %v2477_v48, %v402_v49 }
 0x3ec   :  { %406 = vrot.lane.b32.xlu0 %v404_v50, %s2602_s26 }
 0x3f0   :  { %252 = vrot.lane.b32.xlu0 %v2143_v51, %s2602_s26 }
 0x45e   :  { %v407_v54 = vpop.permute.xlu0 %406 }
 0x45f   :  { %v409_v55 = vadd.f32 %v2145_v43, %v407_v54 }
 0x461   :  { %2478 = vtanh.f32 %v409_v55 }
 0x462   :  { %v2767_v56 = vpop.permute.xlu0 %252 }
 0x463   :  { %v255_v59 = vadd.f32 %v2767_v56, %v215_v52 }
 0x465   :  { %v263_v60 = vrot.slane %v255_v59, %v2687_v12 }
 0x46e   :  { %v2479_v57 = vpop.eup %2478 }
 0x46f   :  { %413 = vrot.lane.b32.xlu1 %v2479_v57, %s2604_s30  ;;  %v2146_v57 = vld [vmem:[%s3196_s0 + $0x18] sm:$0xf] }
 0x473   :  { %227 = vrot.lane.b32.xlu1 %v226_v58, %s2604_s30 }
 0x477   :  { %264 = vrot.lane.b32.xlu1 %v263_v60, %s2605_s4 }
 0x4e1   :  { %v414_v62 = vpop.permute.xlu1 %413 }
 0x4e2   :  { %v416_v3 = vmul.f32 %v414_v62, %v411_v61 }
 0x4e4   :  { %v2779_v7 = vadd.f32 %v417_v63, %v416_v3 }
 0x4e5   :  { %v228_v8 = vpop.permute.xlu1 %227 }
 0x4e6   :  { %v230_v9 = vadd.f32 %v2138_v6, %v228_v8  ;;  %v553_v10 = vrot.slane %v2779_v7, %v2687_v12  ;;  %v240_v21 = vadd.f32 %v238_v19, %v228_v8 }
 0x4e8   :  { %v2141_v13 = vmul.f32 -1.442695, %v230_v9  ;;  %554 = vrot.lane.b32.xlu0 %v553_v10, %s2604_s30  ;;  %v2142_v22 = vmul.f32 -1.442695, %v240_v21 }
 0x4e9   :  { %v265_v16 = vpop.permute.xlu1 %264 }
 0x4ea   :  { %2480 = vpow2.f32 %v2141_v13  ;;  %v510_v13 = vrot.slane %v2146_v57, 2 }
 0x4ec   :  { %268 = vrot.lane.b32.xlu0 %v2138_v6, %s2604_s30 }
 0x4f7   :  { %v2481_v14 = vpop.eup %2480 }
 0x4f8   :  { %v234_v15 = vadd.f32 1.0, %v2481_v14 }
 0x4fa   :  { %2482 = vrcp.f32 %v234_v15 }
 0x4fb   :  { %2484 = vpow2.f32 %v2142_v22 }
 0x507   :  { %v2483_v17 = vpop.eup %2482 }
 0x508   :  { %v267_v18 = vmul.f32 %v2483_v17, %v265_v16  ;;  %v2485_v23 = vpop.eup %2484 }
 0x509   :  { %v244_v24 = vadd.f32 1.0, %v2485_v23 }
 0x50a   :  { %273 = vrot.lane.b32.xlu1 %v267_v18, %s2605_s4 }
 0x50b   :  { %2486 = vrcp.f32 %v244_v24 }
 0x518   :  { %v2487_v29 = vpop.eup %2486 }
 0x519   :  { %v278_v30 = vsub.f32 1.0, %v2487_v29  ;;  %v280_v31 = vmul.f32 0.0, %v2487_v29 }
 0x55a   :  { %v555_v20 = vpop.permute.xlu0 %554 }
 0x55b   :  { %2152 = vst.msk [vmem:[%s3197_s5 + $0x2] sm:$0x3] %vm293_vm1, %v555_v20  ;;  %2339 = vmatmul.mubr.msk.f32.vlgmr.msra.gmra.mxu0 %vm33_vm2, %v555_v20 }
 0x55c   :  { %2353 = vmatpush3.msra.mxu0 %v2640_v1  ;;  %2360 = vmatprep.mubr.msk.f32.mxu0 %vm2601_vm0, %v2600_v0 }
 0x55d   :  { %2354 = vmatprep.subr.mxu0 %v2600_v0 }
 0x55e   :  { %2355 = vmatpush3.msra.mxu0 %v2645_v2  ;;  %v269_v25 = vpop.permute.xlu0 %268 }
 0x55f   :  { %2356 = vmatprep.subr.mxu0 %v2600_v0  ;;  %v270_v26 = vrot.slane %v269_v25, 2 }
 0x560   :  { %2357 = vmatpush3.msra.mxu0 %v2658_v4 }
 0x561   :  { %2358 = vmatprep.subr.mxu0 %v2600_v0 }
 0x562   :  { %2359 = vmatpush3.msra.mxu0 %v2668_v5 }
 0x563   :  { %2374 = vmatprep.subr.mxu0 %v2600_v0 }
 0x57c   :  { %v274_v27 = vpop.permute.xlu1 %273 }
 0x57d   :  { %v276_v28 = vadd.f32 %v274_v27, %v270_v26 }
 0x57f   :  { %2488 = vtanh.f32 %v276_v28 }
 0x58c   :  { %v2489_v32 = vpop.eup %2488 }
 0x58d   :  { %v279_v33 = vmul.f32 %v2489_v32, %v278_v30 }
 0x58f   :  { %v2801_v34 = vadd.f32 %v280_v31, %v279_v33 }
 0x591   :  { %2328 = vmatmul.mubr.msk.f32.vlgmr.msra.gmra.mxu1 %vm33_vm2, %v2801_v34 }
 0x592   :  { %2342 = vmatpush3.msra.mxu1 %v2720_v35  ;;  %2349 = vmatprep.mubr.msk.f32.mxu1 %vm2601_vm0, %v2600_v0 }
 0x593   :  { %2343 = vmatprep.subr.mxu1 %v2600_v0 }
 0x594   :  { %2344 = vmatpush3.msra.mxu1 %v2725_v36 }
 0x595   :  { %2345 = vmatprep.subr.mxu1 %v2600_v0 }
 0x596   :  { %2346 = vmatpush3.msra.mxu1 %v2732_v37 }
 0x597   :  { %2347 = vmatprep.subr.mxu1 %v2600_v0 }
 0x598   :  { %2348 = vmatpush3.msra.mxu1 %v2739_v38 }
 0x599   :  { %2363 = vmatprep.subr.mxu1 %v2600_v0 }
 0x61b   :  { %v644_v39 = vpop.f32.mrf.mxu0 }
 0x61c   :  { %v655_v40 = vadd.f32 %v644_v39, %v2685_v11  ;;  %v648_v47 = vadd.f32 %v2154_v46, %v644_v39 }
 0x61d   :  { %v2340_v41 = vpop.f32.mrf.mxu0 }
 0x61e   :  { %v663_v42 = vrot.slane %v655_v40, %v2687_v12  ;;  %v2157_v48 = vmul.f32 -1.442695, %v648_v47 }
 0x620   :  { %664 = vrot.lane.b32.xlu0 %v663_v42, %s2602_s26  ;;  %2490 = vpow2.f32 %v2157_v48  ;;  %v2155_v48 = vld [vmem:[%s3196_s0 + $0x14] sm:$0xf] }
 0x62d   :  { %v2491_v49 = vpop.eup %2490 }
 0x62e   :  { %v652_v50 = vadd.f32 1.0, %v2491_v49  ;;  %v2163_v49 = vld [vmem:[%s3196_s0 + $0xc] sm:$0xf] }
 0x630   :  { %2492 = vrcp.f32 %v652_v50 }
 0x63d   :  { %v2493_v51 = vpop.eup %2492 }
 0x63e   :  { %v674_v18 = vsub.f32 1.0, %v2493_v51  ;;  %v680_v21 = vmul.f32 %v2493_v51, %v2779_v7 }
 0x651   :  { %v487_v43 = vpop.f32.mrf.mxu1 }
 0x652   :  { %v498_v44 = vrot.slane %v487_v43, %v2687_v12  ;;  %v519_v53 = vadd.f32 %v487_v43, %v2767_v56 }
 0x653   :  { %v2329_v45 = vpop.f32.mrf.mxu1 }
 0x654   :  { %499 = vrot.lane.b32.xlu0 %v498_v44, %s2604_s30  ;;  %v527_v55 = vrot.slane %v519_v53, %v2687_v12 }
 0x692   :  { %v665_v52 = vpop.permute.xlu0 %664 }
 0x693   :  { %v667_v54 = vmul.f32 %v2493_v51, %v665_v52 }
 0x695   :  { %669 = vrot.lane.b32.xlu1 %v667_v54, %s2602_s26 }
 0x699   :  { %528 = vrot.lane.b32.xlu1 %v527_v55, %s2605_s4 }
 0x69d   :  { %532 = vrot.lane.b32.xlu1 %v2146_v57, %s2604_s30 }
 0x6c6   :  { %v500_v58 = vpop.permute.xlu0 %499 }
 0x6c7   :  { %v502_v59 = vadd.f32 %v2146_v57, %v500_v58  ;;  %v512_v14 = vadd.f32 %v510_v13, %v500_v58 }
 0x6c9   :  { %v2150_v60 = vmul.f32 -1.442695, %v502_v59  ;;  %v2151_v15 = vmul.f32 -1.442695, %v512_v14 }
 0x6cb   :  { %2494 = vpow2.f32 %v2150_v60 }
 0x6d8   :  { %v2495_v61 = vpop.eup %2494 }
 0x6d9   :  { %v506_v62 = vadd.f32 1.0, %v2495_v61 }
 0x6db   :  { %2496 = vrcp.f32 %v506_v62 }
 0x6e8   :  { %v2497_v6 = vpop.eup %2496 }
 0x707   :  { %v670_v63 = vpop.permute.xlu1 %669 }
 0x708   :  { %v672_v3 = vadd.f32 %v2154_v46, %v670_v63 }
 0x70a   :  { %2498 = vtanh.f32 %v672_v3 }
 0x70b   :  { %v529_v9 = vpop.permute.xlu1 %528  ;;  %2500 = vpow2.f32 %v2151_v15 }
 0x70c   :  { %v531_v10 = vmul.f32 %v2497_v6, %v529_v9 }
 0x70f   :  { %v533_v17 = vpop.permute.xlu1 %532 }
 0x710   :  { %v534_v23 = vrot.slane %v533_v17, 2 }
 0x717   :  { %v2499_v8 = vpop.eup %2498 }
 0x718   :  { %676 = vrot.lane.b32.xlu0 %v2499_v8, %s2604_s30  ;;  %v2501_v16 = vpop.eup %2500  ;;  %v773_v8 = vrot.slane %v2155_v48, 2 }
 0x719   :  { %v516_v20 = vadd.f32 1.0, %v2501_v16 }
 0x71b   :  { %2502 = vrcp.f32 %v516_v20 }
 0x71c   :  { %537 = vrot.lane.b32.xlu0 %v531_v10, %s2605_s4 }
 0x728   :  { %v2503_v28 = vpop.eup %2502 }
 0x729   :  { %v542_v29 = vsub.f32 1.0, %v2503_v28  ;;  %v544_v32 = vmul.f32 %v2503_v28, %v2801_v34 }
 0x78a   :  { %v677_v19 = vpop.permute.xlu0 %676 }
 0x78b   :  { %v679_v22 = vmul.f32 %v677_v19, %v674_v18 }
 0x78d   :  { %v2834_v24 = vadd.f32 %v680_v21, %v679_v22 }
 0x78e   :  { %v538_v25 = vpop.permute.xlu0 %537 }
 0x78f   :  { %v540_v26 = vadd.f32 %v538_v25, %v534_v23  ;;  %v816_v27 = vrot.slane %v2834_v24, %v2687_v12 }
 0x791   :  { %2504 = vtanh.f32 %v540_v26  ;;  %817 = vrot.lane.b32.xlu1 %v816_v27, %s2604_s30 }
 0x79e   :  { %v2505_v30 = vpop.eup %2504 }
 0x79f   :  { %v543_v31 = vmul.f32 %v2505_v30, %v542_v29 }
 0x7a1   :  { %v2840_v7 = vadd.f32 %v544_v32, %v543_v31 }
 0x7a3   :  { %2350 = vmatmul.mubr.msk.f32.vlgmr.msra.gmra.mxu1 %vm33_vm2, %v2840_v7 }
 0x7a4   :  { %2364 = vmatpush3.msra.mxu1 %v2720_v35  ;;  %2371 = vmatprep.mubr.msk.f32.mxu1 %vm2601_vm0, %v2600_v0 }
 0x7a5   :  { %2365 = vmatprep.subr.mxu1 %v2600_v0 }
 0x7a6   :  { %2366 = vmatpush3.msra.mxu1 %v2725_v36 }
 0x7a7   :  { %2367 = vmatprep.subr.mxu1 %v2600_v0 }
 0x7a8   :  { %2368 = vmatpush3.msra.mxu1 %v2732_v37 }
 0x7a9   :  { %2369 = vmatprep.subr.mxu1 %v2600_v0 }
 0x7aa   :  { %2370 = vmatpush3.msra.mxu1 %v2739_v38 }
 0x7ab   :  { %2385 = vmatprep.subr.mxu1 %v2600_v0 }
 0x803   :  { %v818_v33 = vpop.permute.xlu1 %817 }
 0x804   :  { %2161 = vst.msk [vmem:[%s3197_s5 + $0x4] sm:$0x3] %vm293_vm1, %v818_v33  ;;  %2361 = vmatmul.mubr.msk.f32.vlgmr.msra.gmra.mxu0 %vm33_vm2, %v818_v33 }
 0x805   :  { %2375 = vmatpush3.msra.mxu0 %v2640_v1  ;;  %2382 = vmatprep.mubr.msk.f32.mxu0 %vm2601_vm0, %v2600_v0 }
 0x806   :  { %2376 = vmatprep.subr.mxu0 %v2600_v0 }
 0x807   :  { %2377 = vmatpush3.msra.mxu0 %v2645_v2 }
 0x808   :  { %2378 = vmatprep.subr.mxu0 %v2600_v0 }
 0x809   :  { %2379 = vmatpush3.msra.mxu0 %v2658_v4 }
 0x80a   :  { %2380 = vmatprep.subr.mxu0 %v2600_v0 }
 0x80b   :  { %2381 = vmatpush3.msra.mxu0 %v2668_v5 }
 0x80c   :  { %2396 = vmatprep.subr.mxu0 %v2600_v0 }
 0x863   :  { %v750_v39 = vpop.f32.mrf.mxu1 }
 0x864   :  { %v761_v40 = vrot.slane %v750_v39, %v2687_v12  ;;  %v782_v45 = vadd.f32 %v750_v39, %v2767_v56 }
 0x865   :  { %v2351_v41 = vpop.f32.mrf.mxu1 }
 0x866   :  { %762 = vrot.lane.b32.xlu1 %v761_v40, %s2604_s30  ;;  %v790_v47 = vrot.slane %v782_v45, %v2687_v12 }
 0x8c4   :  { %v907_v42 = vpop.f32.mrf.mxu0 }
 0x8c5   :  { %v918_v43 = vadd.f32 %v907_v42, %v2685_v11  ;;  %v911_v50 = vadd.f32 %v2163_v49, %v907_v42 }
 0x8c6   :  { %v2362_v44 = vpop.f32.mrf.mxu0 }
 0x8c7   :  { %v926_v46 = vrot.slane %v918_v43, %v2687_v12  ;;  %v2166_v52 = vmul.f32 -1.442695, %v911_v50 }
 0x8c9   :  { %927 = vrot.lane.b32.xlu0 %v926_v46, %s2602_s26  ;;  %2506 = vpow2.f32 %v2166_v52 }
 0x8cd   :  { %791 = vrot.lane.b32.xlu0 %v790_v47, %s2605_s4 }
 0x8d1   :  { %795 = vrot.lane.b32.xlu0 %v2155_v48, %s2604_s30 }
 0x8d6   :  { %v2507_v55 = vpop.eup %2506 }
 0x8d7   :  { %v915_v57 = vadd.f32 1.0, %v2507_v55 }
 0x8d8   :  { %v763_v51 = vpop.permute.xlu1 %762 }
 0x8d9   :  { %v765_v53 = vadd.f32 %v2155_v48, %v763_v51  ;;  %v775_v9 = vadd.f32 %v773_v8, %v763_v51 }
 0x8db   :  { %v2159_v54 = vmul.f32 -1.442695, %v765_v53  ;;  %v2160_v10 = vmul.f32 -1.442695, %v775_v9 }
 0x8dd   :  { %2508 = vpow2.f32 %v2159_v54 }
 0x8de   :  { %2510 = vrcp.f32 %v915_v57 }
 0x8ea   :  { %v2509_v58 = vpop.eup %2508 }
 0x8eb   :  { %v769_v59 = vadd.f32 1.0, %v2509_v58  ;;  %v2511_v60 = vpop.eup %2510 }
 0x8ec   :  { %v937_v29 = vsub.f32 1.0, %v2511_v60  ;;  %v943_v31 = vmul.f32 %v2511_v60, %v2834_v24  ;;  %v2164_v24 = vld [vmem:[%s3196_s0 + $0x10] sm:$0xf] }
 0x8ed   :  { %2512 = vrcp.f32 %v769_v59  ;;  %v2172_v59 = vld [vmem:[%s3196_s0 + $0x10] sm:$0xf] }
 0x8ee   :  { %2514 = vpow2.f32 %v2160_v10 }
 0x8fa   :  { %v2513_v63 = vpop.eup %2512 }
 0x8fb   :  { %v2515_v13 = vpop.eup %2514 }
 0x8fc   :  { %v779_v14 = vadd.f32 1.0, %v2515_v13 }
 0x8fe   :  { %2516 = vrcp.f32 %v779_v14 }
 0x90b   :  { %v2517_v21 = vpop.eup %2516 }
 0x90c   :  { %v805_v23 = vsub.f32 1.0, %v2517_v21  ;;  %v807_v27 = vmul.f32 %v2517_v21, %v2840_v7 }
 0x93b   :  { %v928_v61 = vpop.permute.xlu0 %927 }
 0x93c   :  { %v930_v62 = vmul.f32 %v2511_v60, %v928_v61 }
 0x93e   :  { %932 = vrot.lane.b32.xlu1 %v930_v62, %s2602_s26  ;;  %v1036_v62 = vrot.slane %v2164_v24, 2 }
 0x93f   :  { %v792_v3 = vpop.permute.xlu0 %791 }
 0x940   :  { %v794_v6 = vmul.f32 %v2513_v63, %v792_v3 }
 0x942   :  { %800 = vrot.lane.b32.xlu1 %v794_v6, %s2605_s4 }
 0x943   :  { %v796_v15 = vpop.permute.xlu0 %795 }
 0x944   :  { %v797_v18 = vrot.slane %v796_v15, 2 }
 0x9b0   :  { %v933_v16 = vpop.permute.xlu1 %932 }
 0x9b1   :  { %v935_v17 = vadd.f32 %v2163_v49, %v933_v16 }
 0x9b3   :  { %2518 = vtanh.f32 %v935_v17 }
 0x9b4   :  { %v801_v19 = vpop.permute.xlu1 %800 }
 0x9b5   :  { %v803_v20 = vadd.f32 %v801_v19, %v797_v18 }
 0x9b7   :  { %2520 = vtanh.f32 %v803_v20 }
 0x9c0   :  { %v2519_v22 = vpop.eup %2518 }
 0x9c1   :  { %939 = vrot.lane.b32.xlu0 %v2519_v22, %s2604_s30 }
 0x9c4   :  { %v2521_v25 = vpop.eup %2520 }
 0x9c5   :  { %v806_v26 = vmul.f32 %v2521_v25, %v805_v23 }
 0x9c7   :  { %v2888_v28 = vadd.f32 %v807_v27, %v806_v26 }
 0x9c9   :  { %2372 = vmatmul.mubr.msk.f32.vlgmr.msra.gmra.mxu1 %vm33_vm2, %v2888_v28 }
 0x9ca   :  { %2386 = vmatpush3.msra.mxu1 %v2720_v35  ;;  %2393 = vmatprep.mubr.msk.f32.mxu1 %vm2601_vm0, %v2600_v0 }
 0x9cb   :  { %2387 = vmatprep.subr.mxu1 %v2600_v0 }
 0x9cc   :  { %2388 = vmatpush3.msra.mxu1 %v2725_v36 }
 0x9cd   :  { %2389 = vmatprep.subr.mxu1 %v2600_v0 }
 0x9ce   :  { %2390 = vmatpush3.msra.mxu1 %v2732_v37 }
 0x9cf   :  { %2391 = vmatprep.subr.mxu1 %v2600_v0 }
 0x9d0   :  { %2392 = vmatpush3.msra.mxu1 %v2739_v38 }
 0x9d1   :  { %2407 = vmatprep.subr.mxu1 %v2600_v0 }
 0xa33   :  { %v940_v30 = vpop.permute.xlu0 %939 }
 0xa34   :  { %v942_v32 = vmul.f32 %v940_v30, %v937_v29 }
 0xa36   :  { %v2903_v33 = vadd.f32 %v943_v31, %v942_v32 }
 0xa38   :  { %v1079_v39 = vrot.slane %v2903_v33, %v2687_v12 }
 0xa3a   :  { %1080 = vrot.lane.b32.xlu1 %v1079_v39, %s2604_s30 }
 0xa89   :  { %v1013_v40 = vpop.f32.mrf.mxu1 }
 0xa8a   :  { %v1024_v41 = vrot.slane %v1013_v40, %v2687_v12  ;;  %v1045_v42 = vadd.f32 %v1013_v40, %v2767_v56  ;;  %v2173_v40 = vld [vmem:[%s3196_s0 + $0xc] sm:$0xf] }
 0xa8b   :  { %v2373_v43 = vpop.f32.mrf.mxu1 }
 0xa8c   :  { %v1053_v44 = vrot.slane %v1045_v42, %v2687_v12  ;;  %1025 = vrot.lane.b32.xlu0 %v1024_v41, %s2604_s30 }
 0xa8e   :  { %1054 = vrot.lane.b32.xlu1 %v1053_v44, %s2605_s4 }
 0xa92   :  { %1058 = vrot.lane.b32.xlu1 %v2164_v24, %s2604_s30 }
 0xaac   :  { %v1081_v45 = vpop.permute.xlu1 %1080 }
 0xaad   :  { %2170 = vst.msk [vmem:[%s3197_s5 + $0x6] sm:$0x3] %vm293_vm1, %v1081_v45  ;;  %2383 = vmatmul.mubr.msk.f32.vlgmr.msra.gmra.mxu0 %vm33_vm2, %v1081_v45 }
 0xaae   :  { %2397 = vmatpush3.msra.mxu0 %v2640_v1  ;;  %2404 = vmatprep.mubr.msk.f32.mxu0 %vm2601_vm0, %v2600_v0 }
 0xaaf   :  { %2398 = vmatprep.subr.mxu0 %v2600_v0 }
 0xab0   :  { %2399 = vmatpush3.msra.mxu0 %v2645_v2 }
 0xab1   :  { %2400 = vmatprep.subr.mxu0 %v2600_v0 }
 0xab2   :  { %2401 = vmatpush3.msra.mxu0 %v2658_v4 }
 0xab3   :  { %2402 = vmatprep.subr.mxu0 %v2600_v0 }
 0xab4   :  { %2403 = vmatpush3.msra.mxu0 %v2668_v5 }
 0xab5   :  { %2418 = vmatprep.subr.mxu0 %v2600_v0 }
 0xafe   :  { %v1026_v46 = vpop.permute.xlu0 %1025 }
 0xaff   :  { %v1028_v47 = vadd.f32 %v2164_v24, %v1026_v46  ;;  %v1038_v63 = vadd.f32 %v1036_v62, %v1026_v46 }
 0xb00   :  { %v1055_v57 = vpop.permute.xlu1 %1054 }
 0xb01   :  { %v2168_v48 = vmul.f32 -1.442695, %v1028_v47  ;;  %v2169_v3 = vmul.f32 -1.442695, %v1038_v63 }
 0xb03   :  { %2522 = vpow2.f32 %v2168_v48 }
 0xb04   :  { %v1059_v10 = vpop.permute.xlu1 %1058 }
 0xb05   :  { %v1060_v17 = vrot.slane %v1059_v10, 2 }
 0xb10   :  { %v2523_v49 = vpop.eup %2522 }
 0xb11   :  { %v1032_v50 = vadd.f32 1.0, %v2523_v49 }
 0xb13   :  { %2524 = vrcp.f32 %v1032_v50 }
 0xb20   :  { %v2525_v55 = vpop.eup %2524 }
 0xb21   :  { %v1057_v58 = vmul.f32 %v2525_v55, %v1055_v57 }
 0xb6d   :  { %v1168_v51 = vpop.f32.mrf.mxu0 }
 0xb6e   :  { %v1179_v52 = vadd.f32 %v1168_v51, %v2685_v11  ;;  %v1172_v60 = vadd.f32 %v2172_v59, %v1168_v51 }
 0xb6f   :  { %v2384_v53 = vpop.f32.mrf.mxu0 }
 0xb70   :  { %v1187_v54 = vrot.slane %v1179_v52, %v2687_v12  ;;  %v2175_v61 = vmul.f32 -1.442695, %v1172_v60 }
 0xb72   :  { %1188 = vrot.lane.b32.xlu0 %v1187_v54, %s2602_s26  ;;  %2526 = vpow2.f32 %v2175_v61 }
 0xb73   :  { %2528 = vpow2.f32 %v2169_v3 }
 0xb76   :  { %1063 = vrot.lane.b32.xlu0 %v1057_v58, %s2605_s4 }
 0xb7f   :  { %v2527_v6 = vpop.eup %2526 }
 0xb80   :  { %v1176_v8 = vadd.f32 1.0, %v2527_v6  ;;  %v2529_v9 = vpop.eup %2528 }
 0xb81   :  { %v1042_v13 = vadd.f32 1.0, %v2529_v9 }
 0xb82   :  { %2530 = vrcp.f32 %v1176_v8 }
 0xb83   :  { %2532 = vrcp.f32 %v1042_v13 }
 0xb8f   :  { %v2531_v14 = vpop.eup %2530 }
 0xb90   :  { %v2533_v20 = vpop.eup %2532  ;;  %v1198_v41 = vsub.f32 1.0, %v2531_v14  ;;  %v1204_v43 = vmul.f32 %v2531_v14, %v2903_v33 }
 0xb91   :  { %v1068_v21 = vsub.f32 1.0, %v2533_v20  ;;  %v1070_v25 = vmul.f32 %v2533_v20, %v2888_v28 }
 0xbe4   :  { %v1189_v15 = vpop.permute.xlu0 %1188 }
 0xbe5   :  { %v1191_v16 = vmul.f32 %v2531_v14, %v1189_v15 }
 0xbe7   :  { %1193 = vrot.lane.b32.xlu1 %v1191_v16, %s2602_s26  ;;  %v2181_v16 = vld [vmem:[%s3196_s0 + $0x14] sm:$0xf] }
 0xbe8   :  { %v1064_v18 = vpop.permute.xlu0 %1063 }
 0xbe9   :  { %v1066_v19 = vadd.f32 %v1064_v18, %v1060_v17 }
 0xbeb   :  { %2534 = vtanh.f32 %v1066_v19 }
 0xbf8   :  { %v2535_v22 = vpop.eup %2534 }
 0xbf9   :  { %v1069_v23 = vmul.f32 %v2535_v22, %v1068_v21 }
 0xbfb   :  { %v2941_v26 = vadd.f32 %v1070_v25, %v1069_v23 }
 0xbfd   :  { %2394 = vmatmul.mubr.msk.f32.vlgmr.msra.gmra.mxu1 %vm33_vm2, %v2941_v26 }
 0xbfe   :  { %2408 = vmatpush3.msra.mxu1 %v2720_v35  ;;  %2415 = vmatprep.mubr.msk.f32.mxu1 %vm2601_vm0, %v2600_v0 }
 0xbff   :  { %2409 = vmatprep.subr.mxu1 %v2600_v0 }
 0xc00   :  { %2410 = vmatpush3.msra.mxu1 %v2725_v36 }
 0xc01   :  { %2411 = vmatprep.subr.mxu1 %v2600_v0 }
 0xc02   :  { %2412 = vmatpush3.msra.mxu1 %v2732_v37 }
 0xc03   :  { %2413 = vmatprep.subr.mxu1 %v2600_v0 }
 0xc04   :  { %2414 = vmatpush3.msra.mxu1 %v2739_v38 }
 0xc05   :  { %2429 = vmatprep.subr.mxu1 %v2600_v0 }
 0xc59   :  { %v1194_v27 = vpop.permute.xlu1 %1193 }
 0xc5a   :  { %v1196_v29 = vadd.f32 %v2172_v59, %v1194_v27 }
 0xc5c   :  { %2536 = vtanh.f32 %v1196_v29 }
 0xc69   :  { %v2537_v30 = vpop.eup %2536 }
 0xc6a   :  { %1200 = vrot.lane.b32.xlu0 %v2537_v30, %s2604_s30 }
 0xcbd   :  { %v1274_v31 = vpop.f32.mrf.mxu1 }
 0xcbe   :  { %v1285_v32 = vrot.slane %v1274_v31, %v2687_v12  ;;  %v1306_v45 = vadd.f32 %v1274_v31, %v2767_v56 }
 0xcbf   :  { %v2395_v39 = vpop.f32.mrf.mxu1 }
 0xcc0   :  { %1286 = vrot.lane.b32.xlu0 %v1285_v32, %s2604_s30  ;;  %v1314_v47 = vrot.slane %v1306_v45, %v2687_v12 }
 0xcc4   :  { %1319 = vrot.lane.b32.xlu0 %v2173_v40, %s2604_s30 }
 0xcdc   :  { %v1201_v42 = vpop.permute.xlu0 %1200 }
 0xcdd   :  { %v1203_v44 = vmul.f32 %v1201_v42, %v1198_v41  ;;  %v2182_v41 = vld [vmem:[%s3196_s0 + $0x8] sm:$0xf] }
 0xcdf   :  { %v2963_v24 = vadd.f32 %v1204_v43, %v1203_v44 }
 0xce1   :  { %v1340_v46 = vrot.slane %v2963_v24, %v2687_v12 }
 0xce3   :  { %1341 = vrot.lane.b32.xlu1 %v1340_v46, %s2604_s30 }
 0xce7   :  { %1315 = vrot.lane.b32.xlu1 %v1314_v47, %s2605_s4 }
 0xd32   :  { %v1287_v48 = vpop.permute.xlu0 %1286 }
 0xd33   :  { %v1289_v49 = vadd.f32 %v2173_v40, %v1287_v48 }
 0xd35   :  { %v2177_v50 = vmul.f32 -1.442695, %v1289_v49 }
 0xd36   :  { %v1320_v60 = vpop.permute.xlu0 %1319 }
 0xd37   :  { %2538 = vpow2.f32 %v2177_v50  ;;  %v1321_v61 = vrot.slane %v1320_v60, 2 }
 0xd44   :  { %v2539_v51 = vpop.eup %2538 }
 0xd45   :  { %v1293_v33 = vadd.f32 1.0, %v2539_v51 }
 0xd47   :  { %2540 = vrcp.f32 %v1293_v33 }
 0xd54   :  { %v2541_v53 = vpop.eup %2540 }
 0xd55   :  { %v2971_v52 = vpop.permute.xlu1 %1341 }
 0xd56   :  { %2405 = vmatmul.mubr.msk.f32.vlgmr.msra.gmra.mxu0 %vm33_vm2, %v2971_v52 }
 0xd57   :  { %2419 = vmatpush3.msra.mxu0 %v2640_v1  ;;  %2426 = vmatprep.mubr.msk.f32.mxu0 %vm2601_vm0, %v2600_v0  ;;  %v1297_v1 = vrot.slane %v2173_v40, 2 }
 0xd58   :  { %2420 = vmatprep.subr.mxu0 %v2600_v0 }
 0xd59   :  { %v1316_v54 = vpop.permute.xlu1 %1315  ;;  %2421 = vmatpush3.msra.mxu0 %v2645_v2  ;;  %v1299_v57 = vadd.f32 %v1297_v1, %v1287_v48  ;;  %v1556_v1 = vrot.slane %v2182_v41, 2 }
 0xd5a   :  { %v1318_v55 = vmul.f32 %v2541_v53, %v1316_v54  ;;  %2422 = vmatprep.subr.mxu0 %v2600_v0 }
 0xd5b   :  { %2423 = vmatpush3.msra.mxu0 %v2658_v4  ;;  %v2178_v58 = vmul.f32 -1.442695, %v1299_v57 }
 0xd5c   :  { %1324 = vrot.lane.b32.xlu1 %v1318_v55, %s2605_s4  ;;  %2424 = vmatprep.subr.mxu0 %v2600_v0 }
 0xd5d   :  { %2425 = vmatpush3.msra.mxu0 %v2668_v5  ;;  %2542 = vpow2.f32 %v2178_v58 }
 0xd5e   :  { %2440 = vmatprep.subr.mxu0 %v2600_v0 }
 0xd6a   :  { %v2543_v59 = vpop.eup %2542 }
 0xd6b   :  { %v1303_v2 = vadd.f32 1.0, %v2543_v59 }
 0xd6d   :  { %2544 = vrcp.f32 %v1303_v2 }
 0xd7a   :  { %v2545_v4 = vpop.eup %2544 }
 0xd7b   :  { %v1329_v3 = vsub.f32 1.0, %v2545_v4  ;;  %v1331_v5 = vmul.f32 %v2545_v4, %v2941_v26 }
 0xdce   :  { %v1325_v62 = vpop.permute.xlu1 %1324 }
 0xdcf   :  { %v1327_v63 = vadd.f32 %v1325_v62, %v1321_v61  ;;  %v2597_v62 = vld [vmem:[%s3194_s1 + $0x10] sm:$0xff] }
 0xdd1   :  { %2546 = vtanh.f32 %v1327_v63 }
 0xdde   :  { %v2547_v6 = vpop.eup %2546 }
 0xddf   :  { %v1330_v8 = vmul.f32 %v2547_v6, %v1329_v3  ;;  %v2598_v3 = vld [vmem:[%s3194_s1 + $0x8] sm:$0xff] }
 0xde1   :  { %v2987_v9 = vadd.f32 %v1331_v5, %v1330_v8  ;;  %v2599_v8 = vld [vmem:[%s3194_s1] sm:$0xff] }
 0xde3   :  { %2416 = vmatmul.mubr.msk.f32.vlgmr.msra.gmra.mxu1 %vm33_vm2, %v2987_v9 }
 0xde4   :  { %2430 = vmatpush3.msra.mxu1 %v2720_v35  ;;  %2437 = vmatprep.mubr.msk.f32.mxu1 %vm2601_vm0, %v2600_v0 }
 0xde5   :  { %2431 = vmatprep.subr.mxu1 %v2600_v0 }
 0xde6   :  { %2432 = vmatpush3.msra.mxu1 %v2725_v36 }
 0xde7   :  { %2433 = vmatprep.subr.mxu1 %v2600_v0 }
 0xde8   :  { %2434 = vmatpush3.msra.mxu1 %v2732_v37 }
 0xde9   :  { %2435 = vmatprep.subr.mxu1 %v2600_v0 }
 0xdea   :  { %2436 = vmatpush3.msra.mxu1 %v2739_v38 }
 0xdeb   :  { %2451 = vmatprep.subr.mxu1 %v2600_v0 }
 0xe16   :  { %v1427_v10 = vpop.f32.mrf.mxu0 }
 0xe17   :  { %v1438_v13 = vadd.f32 %v1427_v10, %v2685_v11  ;;  %v1431_v17 = vadd.f32 %v2181_v16, %v1427_v10 }
 0xe18   :  { %v2406_v14 = vpop.f32.mrf.mxu0 }
 0xe19   :  { %v1446_v15 = vrot.slane %v1438_v13, %v2687_v12  ;;  %v2184_v18 = vmul.f32 -1.442695, %v1431_v17 }
 0xe1b   :  { %1447 = vrot.lane.b32.xlu0 %v1446_v15, %s2602_s26  ;;  %2548 = vpow2.f32 %v2184_v18 }
 0xe28   :  { %v2549_v19 = vpop.eup %2548 }
 0xe29   :  { %v1435_v20 = vadd.f32 1.0, %v2549_v19 }
 0xe2b   :  { %2550 = vrcp.f32 %v1435_v20 }
 0xe38   :  { %v2551_v21 = vpop.eup %2550 }
 0xe39   :  { %v1457_v50 = vsub.f32 1.0, %v2551_v21  ;;  %v1463_v33 = vmul.f32 %v2551_v21, %v2963_v24  ;;  %v2596_v24 = vld [vmem:[%s3194_s1 + $0x18] sm:$0xff] }
 0xe8d   :  { %v1448_v22 = vpop.permute.xlu0 %1447 }
 0xe8e   :  { %v1450_v23 = vmul.f32 %v2551_v21, %v1448_v22 }
 0xe90   :  { %1452 = vrot.lane.b32.xlu1 %v1450_v23, %s2602_s26 }
 0xea3   :  { %v1533_v25 = vpop.f32.mrf.mxu1 }
 0xea4   :  { %v1544_v27 = vrot.slane %v1533_v25, %v2687_v12  ;;  %v1565_v29 = vadd.f32 %v1533_v25, %v2767_v56 }
 0xea5   :  { %v2417_v30 = vpop.f32.mrf.mxu1 }
 0xea6   :  { %1545 = vrot.lane.b32.xlu1 %v1544_v27, %s2604_s30  ;;  %v1573_v31 = vrot.slane %v1565_v29, %v2687_v12 }
 0xeaa   :  { %1574 = vrot.lane.b32.xlu1 %v1573_v31, %s2605_s4 }
 0xf02   :  { %v1453_v32 = vpop.permute.xlu1 %1452 }
 0xf03   :  { %v1455_v39 = vadd.f32 %v2181_v16, %v1453_v32 }
 0xf05   :  { %2552 = vtanh.f32 %v1455_v39 }
 0xf12   :  { %v2553_v40 = vpop.eup %2552 }
 0xf13   :  { %1459 = vrot.lane.b32.xlu0 %v2553_v40, %s2604_s30 }
 0xf18   :  { %v1546_v42 = vpop.permute.xlu1 %1545 }
 0xf19   :  { %v1548_v43 = vadd.f32 %v2182_v41, %v1546_v42  ;;  %v1558_v57 = vadd.f32 %v1556_v1, %v1546_v42 }
 0xf1b   :  { %v2186_v44 = vmul.f32 -1.442695, %v1548_v43  ;;  %v2187_v58 = vmul.f32 -1.442695, %v1558_v57 }
 0xf1c   :  { %v1575_v48 = vpop.permute.xlu1 %1574 }
 0xf1d   :  { %2554 = vpow2.f32 %v2186_v44 }
 0xf2a   :  { %v2555_v45 = vpop.eup %2554 }
 0xf2b   :  { %v1552_v46 = vadd.f32 1.0, %v2555_v45 }
 0xf2d   :  { %2556 = vrcp.f32 %v1552_v46 }
 0xf2e   :  { %2558 = vpow2.f32 %v2187_v58 }
 0xf3a   :  { %v2557_v47 = vpop.eup %2556 }
 0xf3b   :  { %v1577_v49 = vmul.f32 %v2557_v47, %v1575_v48  ;;  %v2559_v59 = vpop.eup %2558 }
 0xf3c   :  { %v1562_v2 = vadd.f32 1.0, %v2559_v59 }
 0xf3d   :  { %1583 = vrot.lane.b32.xlu1 %v1577_v49, %s2605_s4 }
 0xf3e   :  { %2560 = vrcp.f32 %v1562_v2 }
 0xf4b   :  { %v2561_v5 = vpop.eup %2560 }
 0xf4c   :  { %v1588_v10 = vsub.f32 1.0, %v2561_v5  ;;  %v1590_v15 = vmul.f32 %v2561_v5, %v2987_v9 }
 0xf85   :  { %v1460_v51 = vpop.permute.xlu0 %1459 }
 0xf86   :  { %v1462_v53 = vmul.f32 %v1460_v51, %v1457_v50 }
 0xf88   :  { %v3019_v54 = vadd.f32 %v1463_v33, %v1462_v53 }
 0xf8a   :  { %v1599_v55 = vrot.slane %v3019_v54, %v2687_v12 }
 0xf8c   :  { %1600 = vrot.lane.b32.xlu0 %v1599_v55, %s2604_s30 }
 0xf90   :  { %1578 = vrot.lane.b32.xlu0 %v2182_v41, %s2604_s30 }
 0xfaf   :  { %v1584_v4 = vpop.permute.xlu1 %1583 }
 0xffe   :  { %v3025_v60 = vpop.permute.xlu0 %1600 }
 0xfff   :  { %2427 = vmatmul.mubr.msk.f32.vlgmr.msra.gmra.mxu0 %vm33_vm2, %v3025_v60 }
0x1000   :  { %2441 = vmatpush3.msra.mxu0 %v2596_v24  ;;  %2448 = vmatprep.mubr.msk.f32.mxu0 %vm2601_vm0, %v2600_v0 }
0x1001   :  { %2442 = vmatprep.subr.mxu0 %v2600_v0 }
0x1002   :  { %v1579_v61 = vpop.permute.xlu0 %1578  ;;  %2443 = vmatpush3.msra.mxu0 %v2597_v62 }
0x1003   :  { %v1580_v63 = vrot.slane %v1579_v61, 2  ;;  %2444 = vmatprep.subr.mxu0 %v2600_v0 }
0x1004   :  { %2445 = vmatpush3.msra.mxu0 %v2598_v3 }
0x1005   :  { %v1586_v6 = vadd.f32 %v1584_v4, %v1580_v63  ;;  %2446 = vmatprep.subr.mxu0 %v2600_v0 }
0x1006   :  { %2447 = vmatpush3.msra.mxu0 %v2599_v8 }
0x1007   :  { %2562 = vtanh.f32 %v1586_v6 }
0x1014   :  { %v2563_v13 = vpop.eup %2562 }
0x1015   :  { %v1589_v14 = vmul.f32 %v2563_v13, %v1588_v10 }
0x1017   :  { %v3047_v16 = vadd.f32 %v1590_v15, %v1589_v14 }
0x1019   :  { %2438 = vmatmul.mubr.msk.f32.vlgmr.msra.gmra.mxu1 %vm33_vm2, %v3047_v16 }
0x101a   :  { %2452 = vmatpush3.msra.mxu1 %v2720_v35  ;;  %2459 = vmatprep.mubr.msk.f32.mxu1 %vm2601_vm0, %v2600_v0 }
0x101b   :  { %2453 = vmatprep.subr.mxu1 %v2600_v0 }
0x101c   :  { %2454 = vmatpush3.msra.mxu1 %v2725_v36 }
0x101d   :  { %2455 = vmatprep.subr.mxu1 %v2600_v0 }
0x101e   :  { %2456 = vmatpush3.msra.mxu1 %v2732_v37  ;;  %v2191_v37 = vld [vmem:[%s3196_s0 + $0x4] sm:$0xf] }
0x101f   :  { %2457 = vmatprep.subr.mxu1 %v2600_v0  ;;  %v1815_v57 = vrot.slane %v2191_v37, 2 }
0x1020   :  { %2458 = vmatpush3.msra.mxu1 %v2739_v38  ;;  %v2190_v38 = vld [vmem:[%s3196_s0 + $0x18] sm:$0xf] }
0x10bf   :  { %v1686_v17 = vpop.f32.mrf.mxu0 }
0x10c0   :  { %v1697_v18 = vadd.f32 %v1686_v17, %v2685_v11  ;;  %v1690_v23 = vadd.f32 %v2190_v38, %v1686_v17 }
0x10c1   :  { %v2428_v19 = vpop.f32.mrf.mxu0 }
0x10c2   :  { %v1705_v35 = vrot.slane %v1697_v18, %v2687_v12  ;;  %v2193_v25 = vmul.f32 -1.442695, %v1690_v23 }
0x10c4   :  { %1706 = vrot.lane.b32.xlu0 %v1705_v35, %s2602_s26  ;;  %2564 = vpow2.f32 %v2193_v25 }
0x10d1   :  { %v2565_v27 = vpop.eup %2564 }
0x10d2   :  { %v1694_v29 = vadd.f32 1.0, %v2565_v27 }
0x10d4   :  { %2566 = vrcp.f32 %v1694_v29 }
0x10d9   :  { %v1792_v20 = vpop.f32.mrf.mxu1 }
0x10da   :  { %v1803_v21 = vrot.slane %v1792_v20, %v2687_v12  ;;  %v1824_v36 = vadd.f32 %v1792_v20, %v2767_v56 }
0x10db   :  { %v2439_v22 = vpop.f32.mrf.mxu1 }
0x10dc   :  { %1804 = vrot.lane.b32.xlu0 %v1803_v21, %s2604_s30  ;;  %v1832_v0 = vrot.slane %v1824_v36, %v2687_v12  ;;  %v2199_v22 = vld [vmem:[%s3196_s0 + $0x1c] sm:$0xf] }
0x10e0   :  { %1833 = vrot.lane.b32.xlu0 %v1832_v0, %s2605_s4 }
0x10e1   :  { %v2567_v30 = vpop.eup %2566 }
0x10e2   :  { %v1716_v47 = vsub.f32 1.0, %v2567_v30  ;;  %v1722_v49 = vmul.f32 %v2567_v30, %v3019_v54 }
0x10e4   :  { %1837 = vrot.lane.b32.xlu0 %v2191_v37, %s2604_s30 }
0x1136   :  { %v1707_v31 = vpop.permute.xlu0 %1706 }
0x1137   :  { %v1709_v32 = vmul.f32 %v2567_v30, %v1707_v31 }
0x1139   :  { %1711 = vrot.lane.b32.xlu1 %v1709_v32, %s2602_s26 }
0x114e   :  { %v1805_v42 = vpop.permute.xlu0 %1804 }
0x114f   :  { %v1807_v43 = vadd.f32 %v2191_v37, %v1805_v42  ;;  %v1817_v58 = vadd.f32 %v1815_v57, %v1805_v42 }
0x1151   :  { %v2195_v44 = vmul.f32 -1.442695, %v1807_v43  ;;  %v2196_v59 = vmul.f32 -1.442695, %v1817_v58  ;;  %v302_v43 = vrot.slane %v2801_v34, %v2687_v12 }
0x1152   :  { %v1834_v55 = vpop.permute.xlu0 %1833 }
0x1156   :  { %v1838_v24 = vpop.permute.xlu0 %1837 }
0x1157   :  { %v1839_v62 = vrot.slane %v1838_v24, 2 }
0x11ab   :  { %v1712_v39 = vpop.permute.xlu1 %1711 }
0x11ac   :  { %v1714_v40 = vadd.f32 %v2190_v38, %v1712_v39 }
0x11ae   :  { %2568 = vtanh.f32 %v1714_v40 }
0x11af   :  { %2570 = vpow2.f32 %v2195_v44  ;;  %v829_v44 = vrot.slane %v2888_v28, %v2687_v12  ;;  %v566_v28 = vrot.slane %v2840_v7, %v2687_v12 }
0x11bb   :  { %v2569_v41 = vpop.eup %2568 }
0x11bc   :  { %1718 = vrot.lane.b32.xlu1 %v2569_v41, %s2604_s30  ;;  %v2571_v45 = vpop.eup %2570 }
0x11bd   :  { %v1811_v46 = vadd.f32 1.0, %v2571_v45  ;;  %v1352_v45 = vrot.slane %v2987_v9, %v2687_v12  ;;  %v1092_v9 = vrot.slane %v2941_v26, %v2687_v12 }
0x11bf   :  { %2572 = vrcp.f32 %v1811_v46 }
0x11c0   :  { %2574 = vpow2.f32 %v2196_v59 }
0x11cc   :  { %v2573_v53 = vpop.eup %2572 }
0x11cd   :  { %v1836_v1 = vmul.f32 %v2573_v53, %v1834_v55  ;;  %v2575_v2 = vpop.eup %2574 }
0x11ce   :  { %v1821_v54 = vadd.f32 1.0, %v2575_v2 }
0x11d0   :  { %2576 = vrcp.f32 %v1821_v54 }
0x11dd   :  { %v2577_v3 = vpop.eup %2576 }
0x11de   :  { %v1847_v6 = vsub.f32 1.0, %v2577_v3  ;;  %v1849_v10 = vmul.f32 %v2577_v3, %v3047_v16 }
0x122e   :  { %v1719_v48 = vpop.permute.xlu1 %1718 }
0x122f   :  { %v1721_v50 = vmul.f32 %v1719_v48, %v1716_v47 }
0x1231   :  { %v3078_v51 = vadd.f32 %v1722_v49, %v1721_v50 }
0x1233   :  { %v1858_v33 = vrot.slane %v3078_v51, %v2687_v12 }
0x1235   :  { %1859 = vrot.lane.b32.xlu1 %v1858_v33, %s2604_s30  ;;  %v1611_v33 = vrot.slane %v3047_v16, %v2687_v12 }
0x1239   :  { %1842 = vrot.lane.b32.xlu1 %v1836_v1, %s2605_s4 }
0x12a7   :  { %v3084_v61 = vpop.permute.xlu1 %1859 }
0x12a8   :  { %2449 = vmatmul.mubr.msk.f32.vlgmr.msra.gmra.mxu0 %vm33_vm2, %v3084_v61 }
0x12ab   :  { %v1843_v63 = vpop.permute.xlu1 %1842 }
0x12ac   :  { %v1845_v4 = vadd.f32 %v1843_v63, %v1839_v62 }
0x12ae   :  { %2578 = vtanh.f32 %v1845_v4 }
0x12bb   :  { %v2579_v8 = vpop.eup %2578 }
0x12bc   :  { %v1848_v5 = vmul.f32 %v2579_v8, %v1847_v6 }
0x12be   :  { %v3089_v13 = vadd.f32 %v1849_v10, %v1848_v5 }
0x12c0   :  { %2460 = vmatmul.mubr.msk.f32.vlgmr.msra.gmra.mxu1 %vm33_vm2, %v3089_v13  ;;  %v1870_v46 = vrot.slane %v3089_v13, %v2687_v12 }
0x1368   :  { %v1945_v14 = vpop.f32.mrf.mxu0 }
0x1369   :  { %v1956_v15 = vadd.f32 %v1945_v14, %v2685_v11  ;;  %v1876_v11 = vld [vmem:[%s3196_s0] sm:$0xf]  ;;  %v1949_v0 = vadd.f32 %v2199_v22, %v1945_v14 }
0x136a   :  { %v2450_v17 = vpop.f32.mrf.mxu0  ;;  %v2074_v49 = vrot.slane %v1876_v11, 2 }
0x136b   :  { %v1964_v18 = vrot.slane %v1956_v15, %v2687_v12  ;;  %v2201_v37 = vmul.f32 -1.442695, %v1949_v0 }
0x136d   :  { %1965 = vrot.lane.b32.xlu0 %v1964_v18, %s2602_s26  ;;  %2580 = vpow2.f32 %v2201_v37 }
0x1380   :  { %v2051_v19 = vpop.f32.mrf.mxu1 }
0x1381   :  { %v2062_v35 = vrot.slane %v2051_v19, %v2687_v12  ;;  %v2083_v20 = vadd.f32 %v2051_v19, %v2767_v56  ;;  %v2581_v56 = vpop.eup %2580 }
0x1382   :  { %v2461_v21 = vpop.f32.mrf.mxu1  ;;  %v1953_v38 = vadd.f32 1.0, %v2581_v56 }
0x1383   :  { %v2091_v36 = vrot.slane %v2083_v20, %v2687_v12  ;;  %2063 = vrot.lane.b32.xlu1 %v2062_v35, %s2604_s30 }
0x1384   :  { %2582 = vrcp.f32 %v1953_v38 }
0x1385   :  { %2092 = vrot.lane.b32.xlu0 %v2091_v36, %s2605_s4 }
0x1389   :  { %2096 = vrot.lane.b32.xlu0 %v1876_v11, %s2604_s30 }
0x1391   :  { %v3108_v23 = vpop.eup %2582 }
0x1392   :  { %v1975_v8 = vsub.f32 1.0, %v3108_v23  ;;  %v1981_v10 = vmul.f32 %v3108_v23, %v3078_v51 }
0x13df   :  { %v1966_v25 = vpop.permute.xlu0 %1965 }
0x13e0   :  { %v1968_v27 = vmul.f32 %v3108_v23, %v1966_v25 }
0x13e2   :  { %1970 = vrot.lane.b32.xlu1 %v1968_v27, %s2602_s26 }
0x13f5   :  { %v2064_v29 = vpop.permute.xlu1 %2063 }
0x13f6   :  { %v2066_v30 = vadd.f32 %v2064_v29, %v1876_v11  ;;  %v2076_v50 = vadd.f32 %v2074_v49, %v2064_v29 }
0x13f7   :  { %v2093_v41 = vpop.permute.xlu0 %2092 }
0x13f8   :  { %v2203_v31 = vmul.f32 -1.442695, %v2066_v30  ;;  %v2204_v53 = vmul.f32 -1.442695, %v2076_v50 }
0x13fa   :  { %2584 = vpow2.f32 %v2203_v31 }
0x13fb   :  { %v2097_v1 = vpop.permute.xlu0 %2096 }
0x13fc   :  { %v2098_v7 = vrot.slane %v2097_v1, 2 }
0x1407   :  { %v2585_v32 = vpop.eup %2584 }
0x1408   :  { %v2070_v39 = vadd.f32 1.0, %v2585_v32 }
0x140a   :  { %2586 = vrcp.f32 %v2070_v39 }
0x1417   :  { %v2587_v40 = vpop.eup %2586 }
0x1418   :  { %v2095_v42 = vmul.f32 %v2587_v40, %v2093_v41 }
0x141a   :  { %2101 = vrot.lane.b32.xlu1 %v2095_v42, %s2605_s4 }
0x141e   :  { %303 = vrot.lane.b32.xlu1 %v302_v43, %s2605_s4 }
0x1422   :  { %830 = vrot.lane.b32.xlu1 %v829_v44, %s2605_s4 }
0x1426   :  { %1353 = vrot.lane.b32.xlu1 %v1352_v45, %s2605_s4 }
0x142a   :  { %1871 = vrot.lane.b32.xlu1 %v1870_v46, %s2605_s4 }
0x1454   :  { %v1971_v47 = vpop.permute.xlu1 %1970 }
0x1455   :  { %v1973_v48 = vadd.f32 %v2199_v22, %v1971_v47 }
0x1457   :  { %2588 = vtanh.f32 %v1973_v48 }
0x1458   :  { %2590 = vpow2.f32 %v2204_v53 }
0x1464   :  { %v2589_v34 = vpop.eup %2588 }
0x1465   :  { %1977 = vrot.lane.b32.xlu0 %v2589_v34, %s2604_s30  ;;  %v2591_v55 = vpop.eup %2590 }
0x1466   :  { %v2080_v57 = vadd.f32 1.0, %v2591_v55 }
0x1468   :  { %2592 = vrcp.f32 %v2080_v57 }
0x1469   :  { %567 = vrot.lane.b32.xlu0 %v566_v28, %s2605_s4 }
0x146d   :  { %1093 = vrot.lane.b32.xlu0 %v1092_v9, %s2605_s4 }
0x1471   :  { %1612 = vrot.lane.b32.xlu0 %v1611_v33, %s2605_s4 }
0x1475   :  { %v2593_v2 = vpop.eup %2592 }
0x1476   :  { %v2106_v54 = vsub.f32 1.0, %v2593_v2  ;;  %v2108_v3 = vmul.f32 %v2593_v2, %v3089_v13 }
0x148c   :  { %v2102_v58 = vpop.permute.xlu1 %2101 }
0x148d   :  { %v2104_v59 = vadd.f32 %v2102_v58, %v2098_v7 }
0x148f   :  { %2594 = vtanh.f32 %v2104_v59 }
0x1490   :  { %v304_v26 = vpop.permute.xlu1 %303 }
0x1491   :  { %2144 = vst.msk [vmem:[%s3197_s5 + $0xe] sm:$0x3] %vm307_vm3, %v304_v26 }
0x1494   :  { %v831_v16 = vpop.permute.xlu1 %830 }
0x1495   :  { %2162 = vst.msk [vmem:[%s3197_s5 + $0xa] sm:$0x3] %vm307_vm3, %v831_v16 }
0x1496   :  { %2188 = vst.msk [vmem:[%s3197_s5 + $0xa] sm:$0x3] %vm293_vm1, %v3025_v60 }
0x1498   :  { %v1354_v24 = vpop.permute.xlu1 %1353 }
0x1499   :  { %2180 = vst.msk [vmem:[%s3197_s5 + $0x6] sm:$0x3] %vm307_vm3, %v1354_v24 }
0x149c   :  { %v2595_v62 = vpop.eup %2594  ;;  %v1872_v63 = vpop.permute.xlu1 %1871 }
0x149d   :  { %2198 = vst.msk [vmem:[%s3197_s5 + $0x2] sm:$0x3] %vm307_vm3, %v1872_v63  ;;  %v2107_v4 = vmul.f32 %v2595_v62, %v2106_v54 }
0x149f   :  { %v2109_v6 = vadd.f32 %v2108_v3, %v2107_v4 }
0x14a1   :  { %v2129_v60 = vrot.slane %v2109_v6, %v2687_v12 }
0x14a3   :  { %2130 = vrot.lane.b32.xlu1 %v2129_v60, %s2605_s4 }
0x14d7   :  { %v1978_v5 = vpop.permute.xlu0 %1977 }
0x14d8   :  { %v1980_v14 = vmul.f32 %v1978_v5, %v1975_v8 }
0x14da   :  { %v1982_v15 = vadd.f32 %v1981_v10, %v1980_v14 }
0x14db   :  { %v568_v17 = vpop.permute.xlu0 %567 }
0x14dc   :  { %2153 = vst.msk [vmem:[%s3197_s5 + $0xc] sm:$0x3] %vm307_vm3, %v568_v17  ;;  %v2117_v13 = vrot.slane %v1982_v15, %v2687_v12 }
0x14dd   :  { %2197 = vst.msk [vmem:[%s3197_s5 + $0xc] sm:$0x3] %vm293_vm1, %v3084_v61 }
0x14de   :  { %2118 = vrot.lane.b32.xlu0 %v2117_v13, %s2604_s30 }
0x14df   :  { %v1094_v18 = vpop.permute.xlu0 %1093 }
0x14e0   :  { %2171 = vst.msk [vmem:[%s3197_s5 + $0x8] sm:$0x3] %vm307_vm3, %v1094_v18 }
0x14e1   :  { %2179 = vst.msk [vmem:[%s3197_s5 + $0x8] sm:$0x3] %vm293_vm1, %v2971_v52 }
0x14e3   :  { %v1613_v12 = vpop.permute.xlu0 %1612 }
0x14e4   :  { %2189 = vst.msk [vmem:[%s3197_s5 + $0x4] sm:$0x3] %vm307_vm3, %v1613_v12 }
0x1515   :  { %v2131_v51 = vpop.permute.xlu1 %2130 }
0x1516   :  { %2133 = vst.msk [vmem:[%s3197_s5] sm:$0x3] %vm307_vm3, %v2131_v51 }
0x1550   :  { %v2119_v61 = vpop.permute.xlu0 %2118 }
0x1551   :  { %2205 = vst.msk [vmem:[%s3197_s5 + $0xe] sm:$0x3] %vm293_vm1, %v2119_v61 }

</bundles_post_ra>
